<compile_context>
chip_gen: v7x
topology: tpu7x:2x2x1
jax: 0.10.0
libtpu: 0.0.40
codegen_flags: <defaults>
</compile_context>

<pallas_src>
import jax
import jax.numpy as jnp
from jax.experimental import pallas as pl
from jax.experimental.pallas import tpu as pltpu


def _make_lstm_kernel(num_layers: int, T: int, H: int, B: int, compute_dtype):
    """Kernel body for fixed (num_layers, T, H, padded batch B)."""

    def cell(gates, c_prev):
        # Full-width sigmoid: one EUP pass over the whole (B, 4H) tile.
        s = jax.nn.sigmoid(gates)
        g_g = jnp.tanh(gates[:, 2 * H:3 * H])
        # PyTorch gate order: input, forget, cell(g), output.
        c = s[:, 1 * H:2 * H] * c_prev + s[:, 0 * H:1 * H] * g_g
        h = s[:, 3 * H:4 * H] * jnp.tanh(c)
        return h, c

    def kernel(*refs):
        # refs layout:
        #   x_ref (T*B, I),
        #   [w_ih_t (F_in,4H), w_hh_t (H,4H), bias (1,4H)] * num_layers,
        #   w_fc_t (H, O), b_fc (1, O),
        #   out_ref (B, O)
        idx = 0
        x_ref = refs[idx]; idx += 1
        layer_params = []
        for _ in range(num_layers):
            layer_params.append(tuple(refs[idx:idx + 3]))
            idx += 3
        wfc_ref, bfc_ref = refs[idx], refs[idx + 1]; idx += 2
        out_ref = refs[idx]

        # Hoist every weight/bias load out of the time loop.
        wih = [p[0][...] for p in layer_params]    # layer 0: (I,4H); else (H,4H)
        whh = [p[1][...] for p in layer_params]    # (H, 4H)
        bias = [p[2][...] for p in layer_params]   # (1, 4H) f32

        # ---- layer 0: one big input projection for all T timesteps,
        #      kept as an in-register value (bias folded) ----
        gates0_all = (
            jnp.dot(x_ref[...], wih[0], preferred_element_type=jnp.float32)
            + bias[0])                              # (T*B, 4H) f32

        # PyTorch default initial state: h0 = c0 = 0.  States are carried as
        # register values through the statically unrolled loop.
        h = [jnp.zeros((B, H), jnp.float32) for _ in range(num_layers)]
        c = [jnp.zeros((B, H), jnp.float32) for _ in range(num_layers)]

        # ---- wavefront recurrence: layers interleaved inside the time loop ----
        # T is small and static -> full static unroll (LLO scheduler sees the
        # whole dependency DAG, critical path length T + L - 1).
        for t in range(T):
            # layer 0: only h @ W_hh is on the per-step chain
            g0 = (gates0_all[t * B:(t + 1) * B, :]
                  + jnp.dot(h[0].astype(compute_dtype), whh[0],
                            preferred_element_type=jnp.float32))
            h[0], c[0] = cell(g0, c[0])

            # deeper layers: per-step input projection from the layer below
            # (two separate dots so h[l] @ W_hh can start before h[l-1] lands)
            for l in range(1, num_layers):
                gl = (jnp.dot(h[l - 1].astype(compute_dtype), wih[l],
                              preferred_element_type=jnp.float32)
                      + bias[l]
                      + jnp.dot(h[l].astype(compute_dtype), whh[l],
                                preferred_element_type=jnp.float32))
                h[l], c[l] = cell(gl, c[l])

        # fc on the last-timestep hidden state of the last layer
        out_ref[...] = (jnp.dot(h[num_layers - 1].astype(compute_dtype),
                                wfc_ref[...],
                                preferred_element_type=jnp.float32)
                        + bfc_ref[...])

    return kernel


def stock_prediction_lstm_forward(x, lstm_params, fc_w, fc_b,
                                  *, compute_dtype=jnp.bfloat16):
    """Forward pass equivalent to StockPredictionLSTM.forward.

    Args:
      x: (B, T, input_size) float32, batch-first like PyTorch.
      lstm_params: list of dicts per layer with keys
        'w_ih' (4H, F_in), 'w_hh' (4H, H), 'b_ih' (4H,), 'b_hh' (4H,).
      fc_w: (output_size, H), fc_b: (output_size,)
      compute_dtype: dtype for matmul operands (bf16 hits the native MXU path
        on v5e/v6e/v7x); accumulation and gate math stay in f32.
    Returns:
      (B, output_size) float32
    """
    B, T, I = x.shape
    num_layers = len(lstm_params)
    H = lstm_params[0]["w_hh"].shape[1]
    O = fc_w.shape[0]

    # pad batch to a multiple of 8 so every per-step tile is sublane-aligned
    # (padded rows are computed and discarded).
    B_pad = max(8, ((B + 7) // 8) * 8)

    # time-major, flattened to (T*B_pad, I): the big input-projection matmul
    # and the per-step static slices need no in-kernel reshapes.
    x_tm = jnp.transpose(x, (1, 0, 2)).astype(jnp.float32)          # (T, B, I)
    if B_pad != B:
        x_tm = jnp.pad(x_tm, ((0, 0), (0, B_pad - B), (0, 0)))
    x_flat = x_tm.reshape(T * B_pad, I).astype(compute_dtype)

    inputs = [x_flat]
    for p in lstm_params:
        inputs.append(jnp.transpose(p["w_ih"]).astype(compute_dtype))  # (F_in, 4H)
        inputs.append(jnp.transpose(p["w_hh"]).astype(compute_dtype))  # (H,    4H)
        inputs.append((p["b_ih"] + p["b_hh"]).reshape(1, 4 * H)
                      .astype(jnp.float32))                            # (1, 4H)
    inputs.append(jnp.transpose(fc_w).astype(compute_dtype))           # (H, O)
    inputs.append(fc_b.reshape(1, O).astype(jnp.float32))              # (1, O)

    # explicit scoped-VMEM budget derived from the actually-resident buffers
    # (inputs + output + the in-register gates slab), with generous headroom.
    resident = sum(int(a.size) * a.dtype.itemsize for a in inputs)
    resident += B_pad * O * 4 + T * B_pad * 4 * H * 4
    vmem_limit = int(min(max(4 * resident + (4 << 20), 32 << 20), 100 << 20))

    vmem_spec = pl.BlockSpec(memory_space=pltpu.MemorySpace.VMEM)
    kernel = _make_lstm_kernel(num_layers, T, H, B_pad, compute_dtype)

    out = pl.pallas_call(
        kernel,
        out_shape=jax.ShapeDtypeStruct((B_pad, O), jnp.float32),
        in_specs=[vmem_spec] * len(inputs),
        out_specs=vmem_spec,
        compiler_params=pltpu.CompilerParams(vmem_limit_bytes=vmem_limit),
    )(*inputs)
    return out[:B]


def _reference_forward(x, lstm_params, fc_w, fc_b):
    """Pure-JAX f32 reference matching PyTorch nn.LSTM + nn.Linear semantics."""
    B, T, _ = x.shape
    layer_in = x
    H = lstm_params[0]["w_hh"].shape[1]
    h_last = None
    for p in lstm_params:
        h = jnp.zeros((B, H), jnp.float32)
        c = jnp.zeros((B, H), jnp.float32)
        outs = []
        for t in range(T):
            gates = (layer_in[:, t, :] @ p["w_ih"].T + p["b_ih"]
                     + h @ p["w_hh"].T + p["b_hh"])
            i_g = jax.nn.sigmoid(gates[:, 0 * H:1 * H])
            f_g = jax.nn.sigmoid(gates[:, 1 * H:2 * H])
            g_g = jnp.tanh(gates[:, 2 * H:3 * H])
            o_g = jax.nn.sigmoid(gates[:, 3 * H:4 * H])
            c = f_g * c + i_g * g_g
            h = o_g * jnp.tanh(c)
            outs.append(h)
        layer_in = jnp.stack(outs, axis=1)
        h_last = h
    return h_last @ fc_w.T + fc_b


if __name__ == "__main__":
    # small shapes consistent with the module
    B, T = 2, 8
    INPUT_SIZE, HIDDEN_SIZE, NUM_LAYERS, OUTPUT_SIZE = 8, 32, 2, 1

    key = jax.random.PRNGKey(0)

    def uni(key, shape, bound):
        return jax.random.uniform(key, shape, jnp.float32, -bound, bound)

    bound = 1.0 / (HIDDEN_SIZE ** 0.5)

    lstm_params = []
    for layer in range(NUM_LAYERS):
        f_in = INPUT_SIZE if layer == 0 else HIDDEN_SIZE
        key, k1, k2, k3, k4 = jax.random.split(key, 5)
        lstm_params.append({
            "w_ih": uni(k1, (4 * HIDDEN_SIZE, f_in), bound),
            "w_hh": uni(k2, (4 * HIDDEN_SIZE, HIDDEN_SIZE), bound),
            "b_ih": uni(k3, (4 * HIDDEN_SIZE,), bound),
            "b_hh": uni(k4, (4 * HIDDEN_SIZE,), bound),
        })
    key, kfw, kfb, kx = jax.random.split(key, 4)
    fc_w = uni(kfw, (OUTPUT_SIZE, HIDDEN_SIZE), bound)
    fc_b = uni(kfb, (OUTPUT_SIZE,), bound)

    x = jax.random.normal(kx, (B, T, INPUT_SIZE), jnp.float32)

    ref = _reference_forward(x, lstm_params, fc_w, fc_b)

    # f32 matmul-operand path: matches the f32 reference tightly.
    out_f32 = stock_prediction_lstm_forward(x, lstm_params, fc_w, fc_b,
                                            compute_dtype=jnp.float32)
    out_f32 = jax.block_until_ready(out_f32)
    assert out_f32.shape == (B, OUTPUT_SIZE)
    assert jnp.allclose(out_f32, ref, atol=1e-4, rtol=1e-4), (out_f32, ref)

    # default bf16 matmul-operand path (f32 accumulation + f32 gate math):
    # looser tolerance reflects bf16 operand rounding only.
    out_bf16 = stock_prediction_lstm_forward(x, lstm_params, fc_w, fc_b)
    out_bf16 = jax.block_until_ready(out_bf16)
    assert out_bf16.shape == (B, OUTPUT_SIZE)
    assert jnp.allclose(out_bf16, ref, atol=3e-2, rtol=3e-2), (out_bf16, ref)

    print("KERNEL_OK")
</pallas_src>

<mosaic_0001>
module attributes {stable_mosaic.version = 11 : i64} {
  func.func @kernel(%arg0: memref<64x8xf32, #tpu.memory_space<vmem>>, %arg1: memref<8x128xf32, #tpu.memory_space<vmem>>, %arg2: memref<32x128xf32, #tpu.memory_space<vmem>>, %arg3: memref<1x128xf32, #tpu.memory_space<vmem>>, %arg4: memref<32x128xf32, #tpu.memory_space<vmem>>, %arg5: memref<32x128xf32, #tpu.memory_space<vmem>>, %arg6: memref<1x128xf32, #tpu.memory_space<vmem>>, %arg7: memref<32x1xf32, #tpu.memory_space<vmem>>, %arg8: memref<1x1xf32, #tpu.memory_space<vmem>>, %arg9: memref<8x1xf32, #tpu.memory_space<vmem>>) attributes {dimension_semantics = [], scalar_prefetch = 0 : i64, scratch_operands = 0 : i64, tpu.core_type = #tpu.core_type<tc>} {
    %c0 = arith.constant 0 : index
    %c0_0 = arith.constant 0 : index
    %0 = vector.load %arg1[%c0, %c0_0] : memref<8x128xf32, #tpu.memory_space<vmem>>, vector<8x128xf32>
    %c0_1 = arith.constant 0 : index
    %c0_2 = arith.constant 0 : index
    %1 = vector.load %arg4[%c0_1, %c0_2] : memref<32x128xf32, #tpu.memory_space<vmem>>, vector<32x128xf32>
    %c0_3 = arith.constant 0 : index
    %c0_4 = arith.constant 0 : index
    %2 = vector.load %arg2[%c0_3, %c0_4] : memref<32x128xf32, #tpu.memory_space<vmem>>, vector<32x128xf32>
    %c0_5 = arith.constant 0 : index
    %c0_6 = arith.constant 0 : index
    %3 = vector.load %arg5[%c0_5, %c0_6] : memref<32x128xf32, #tpu.memory_space<vmem>>, vector<32x128xf32>
    %c0_7 = arith.constant 0 : index
    %c0_8 = arith.constant 0 : index
    %4 = vector.load %arg3[%c0_7, %c0_8] : memref<1x128xf32, #tpu.memory_space<vmem>>, vector<1x128xf32>
    %c0_9 = arith.constant 0 : index
    %c0_10 = arith.constant 0 : index
    %5 = vector.load %arg6[%c0_9, %c0_10] : memref<1x128xf32, #tpu.memory_space<vmem>>, vector<1x128xf32>
    %c0_11 = arith.constant 0 : index
    %c0_12 = arith.constant 0 : index
    %6 = vector.load %arg0[%c0_11, %c0_12] : memref<64x8xf32, #tpu.memory_space<vmem>>, vector<64x8xf32>
    %cst = arith.constant dense<0.000000e+00> : vector<64x128xf32>
    %7 = tpu.matmul %6, %0, %cst {dimension_numbers = #tpu.dot_dimension_numbers<[1], [0], [0], [1], [0, 0, 1, 1], [], []>} : vector<64x8xf32>, vector<8x128xf32>, vector<64x128xf32> -> vector<64x128xf32>
    %8 = vector.broadcast %4 : vector<1x128xf32> to vector<64x128xf32>
    %9 = arith.addf %7, %8 : vector<64x128xf32>
    %cst_13 = arith.constant 0.000000e+00 : f32
    %10 = vector.broadcast %cst_13 : f32 to vector<8x32xf32>
    %cst_14 = arith.constant 0.000000e+00 : f32
    %11 = vector.broadcast %cst_14 : f32 to vector<8x32xf32>
    %cst_15 = arith.constant 0.000000e+00 : f32
    %12 = vector.broadcast %cst_15 : f32 to vector<8x32xf32>
    %cst_16 = arith.constant 0.000000e+00 : f32
    %13 = vector.broadcast %cst_16 : f32 to vector<8x32xf32>
    %14 = vector.extract_strided_slice %9 {offsets = [0, 0], sizes = [8, 128], strides = [1, 1]} : vector<64x128xf32> to vector<8x128xf32>
    %cst_17 = arith.constant dense<0.000000e+00> : vector<8x128xf32>
    %15 = tpu.matmul %10, %2, %cst_17 {dimension_numbers = #tpu.dot_dimension_numbers<[1], [0], [0], [1], [0, 0, 1, 1], [], []>} : vector<8x32xf32>, vector<32x128xf32>, vector<8x128xf32> -> vector<8x128xf32>
    %16 = arith.addf %14, %15 : vector<8x128xf32>
    %17 = arith.negf %16 : vector<8x128xf32>
    %18 = math.exp %17 : vector<8x128xf32>
    %cst_18 = arith.constant 1.000000e+00 : f32
    %19 = vector.broadcast %cst_18 : f32 to vector<8x128xf32>
    %20 = arith.addf %19, %18 : vector<8x128xf32>
    %21 = arith.divf %19, %20 : vector<8x128xf32>
    %22 = vector.extract_strided_slice %16 {offsets = [0, 64], sizes = [8, 32], strides = [1, 1]} : vector<8x128xf32> to vector<8x32xf32>
    %23 = math.tanh %22 : vector<8x32xf32>
    %24 = vector.extract_strided_slice %21 {offsets = [0, 32], sizes = [8, 32], strides = [1, 1]} : vector<8x128xf32> to vector<8x32xf32>
    %25 = arith.mulf %24, %12 : vector<8x32xf32>
    %26 = vector.extract_strided_slice %21 {offsets = [0, 0], sizes = [8, 32], strides = [1, 1]} : vector<8x128xf32> to vector<8x32xf32>
    %27 = arith.mulf %26, %23 : vector<8x32xf32>
    %28 = arith.addf %25, %27 : vector<8x32xf32>
    %29 = vector.extract_strided_slice %21 {offsets = [0, 96], sizes = [8, 32], strides = [1, 1]} : vector<8x128xf32> to vector<8x32xf32>
    %30 = math.tanh %28 : vector<8x32xf32>
    %31 = arith.mulf %29, %30 : vector<8x32xf32>
    %cst_19 = arith.constant dense<0.000000e+00> : vector<8x128xf32>
    %32 = tpu.matmul %31, %1, %cst_19 {dimension_numbers = #tpu.dot_dimension_numbers<[1], [0], [0], [1], [0, 0, 1, 1], [], []>} : vector<8x32xf32>, vector<32x128xf32>, vector<8x128xf32> -> vector<8x128xf32>
    %33 = vector.broadcast %5 : vector<1x128xf32> to vector<8x128xf32>
    %34 = arith.addf %32, %33 : vector<8x128xf32>
    %cst_20 = arith.constant dense<0.000000e+00> : vector<8x128xf32>
    %35 = tpu.matmul %11, %3, %cst_20 {dimension_numbers = #tpu.dot_dimension_numbers<[1], [0], [0], [1], [0, 0, 1, 1], [], []>} : vector<8x32xf32>, vector<32x128xf32>, vector<8x128xf32> -> vector<8x128xf32>
    %36 = arith.addf %34, %35 : vector<8x128xf32>
    %37 = arith.negf %36 : vector<8x128xf32>
    %38 = math.exp %37 : vector<8x128xf32>
    %cst_21 = arith.constant 1.000000e+00 : f32
    %39 = vector.broadcast %cst_21 : f32 to vector<8x128xf32>
    %40 = arith.addf %39, %38 : vector<8x128xf32>
    %41 = arith.divf %39, %40 : vector<8x128xf32>
    %42 = vector.extract_strided_slice %36 {offsets = [0, 64], sizes = [8, 32], strides = [1, 1]} : vector<8x128xf32> to vector<8x32xf32>
    %43 = math.tanh %42 : vector<8x32xf32>
    %44 = vector.extract_strided_slice %41 {offsets = [0, 32], sizes = [8, 32], strides = [1, 1]} : vector<8x128xf32> to vector<8x32xf32>
    %45 = arith.mulf %44, %13 : vector<8x32xf32>
    %46 = vector.extract_strided_slice %41 {offsets = [0, 0], sizes = [8, 32], strides = [1, 1]} : vector<8x128xf32> to vector<8x32xf32>
    %47 = arith.mulf %46, %43 : vector<8x32xf32>
    %48 = arith.addf %45, %47 : vector<8x32xf32>
    %49 = vector.extract_strided_slice %41 {offsets = [0, 96], sizes = [8, 32], strides = [1, 1]} : vector<8x128xf32> to vector<8x32xf32>
    %50 = math.tanh %48 : vector<8x32xf32>
    %51 = arith.mulf %49, %50 : vector<8x32xf32>
    %52 = vector.extract_strided_slice %9 {offsets = [8, 0], sizes = [8, 128], strides = [1, 1]} : vector<64x128xf32> to vector<8x128xf32>
    %cst_22 = arith.constant dense<0.000000e+00> : vector<8x128xf32>
    %53 = tpu.matmul %31, %2, %cst_22 {dimension_numbers = #tpu.dot_dimension_numbers<[1], [0], [0], [1], [0, 0, 1, 1], [], []>} : vector<8x32xf32>, vector<32x128xf32>, vector<8x128xf32> -> vector<8x128xf32>
    %54 = arith.addf %52, %53 : vector<8x128xf32>
    %55 = arith.negf %54 : vector<8x128xf32>
    %56 = math.exp %55 : vector<8x128xf32>
    %cst_23 = arith.constant 1.000000e+00 : f32
    %57 = vector.broadcast %cst_23 : f32 to vector<8x128xf32>
    %58 = arith.addf %57, %56 : vector<8x128xf32>
    %59 = arith.divf %57, %58 : vector<8x128xf32>
    %60 = vector.extract_strided_slice %54 {offsets = [0, 64], sizes = [8, 32], strides = [1, 1]} : vector<8x128xf32> to vector<8x32xf32>
    %61 = math.tanh %60 : vector<8x32xf32>
    %62 = vector.extract_strided_slice %59 {offsets = [0, 32], sizes = [8, 32], strides = [1, 1]} : vector<8x128xf32> to vector<8x32xf32>
    %63 = arith.mulf %62, %28 : vector<8x32xf32>
    %64 = vector.extract_strided_slice %59 {offsets = [0, 0], sizes = [8, 32], strides = [1, 1]} : vector<8x128xf32> to vector<8x32xf32>
    %65 = arith.mulf %64, %61 : vector<8x32xf32>
    %66 = arith.addf %63, %65 : vector<8x32xf32>
    %67 = vector.extract_strided_slice %59 {offsets = [0, 96], sizes = [8, 32], strides = [1, 1]} : vector<8x128xf32> to vector<8x32xf32>
    %68 = math.tanh %66 : vector<8x32xf32>
    %69 = arith.mulf %67, %68 : vector<8x32xf32>
    %cst_24 = arith.constant dense<0.000000e+00> : vector<8x128xf32>
    %70 = tpu.matmul %69, %1, %cst_24 {dimension_numbers = #tpu.dot_dimension_numbers<[1], [0], [0], [1], [0, 0, 1, 1], [], []>} : vector<8x32xf32>, vector<32x128xf32>, vector<8x128xf32> -> vector<8x128xf32>
    %71 = vector.broadcast %5 : vector<1x128xf32> to vector<8x128xf32>
    %72 = arith.addf %70, %71 : vector<8x128xf32>
    %cst_25 = arith.constant dense<0.000000e+00> : vector<8x128xf32>
    %73 = tpu.matmul %51, %3, %cst_25 {dimension_numbers = #tpu.dot_dimension_numbers<[1], [0], [0], [1], [0, 0, 1, 1], [], []>} : vector<8x32xf32>, vector<32x128xf32>, vector<8x128xf32> -> vector<8x128xf32>
    %74 = arith.addf %72, %73 : vector<8x128xf32>
    %75 = arith.negf %74 : vector<8x128xf32>
    %76 = math.exp %75 : vector<8x128xf32>
    %cst_26 = arith.constant 1.000000e+00 : f32
    %77 = vector.broadcast %cst_26 : f32 to vector<8x128xf32>
    %78 = arith.addf %77, %76 : vector<8x128xf32>
    %79 = arith.divf %77, %78 : vector<8x128xf32>
    %80 = vector.extract_strided_slice %74 {offsets = [0, 64], sizes = [8, 32], strides = [1, 1]} : vector<8x128xf32> to vector<8x32xf32>
    %81 = math.tanh %80 : vector<8x32xf32>
    %82 = vector.extract_strided_slice %79 {offsets = [0, 32], sizes = [8, 32], strides = [1, 1]} : vector<8x128xf32> to vector<8x32xf32>
    %83 = arith.mulf %82, %48 : vector<8x32xf32>
    %84 = vector.extract_strided_slice %79 {offsets = [0, 0], sizes = [8, 32], strides = [1, 1]} : vector<8x128xf32> to vector<8x32xf32>
    %85 = arith.mulf %84, %81 : vector<8x32xf32>
    %86 = arith.addf %83, %85 : vector<8x32xf32>
    %87 = vector.extract_strided_slice %79 {offsets = [0, 96], sizes = [8, 32], strides = [1, 1]} : vector<8x128xf32> to vector<8x32xf32>
    %88 = math.tanh %86 : vector<8x32xf32>
    %89 = arith.mulf %87, %88 : vector<8x32xf32>
    %90 = vector.extract_strided_slice %9 {offsets = [16, 0], sizes = [8, 128], strides = [1, 1]} : vector<64x128xf32> to vector<8x128xf32>
    %cst_27 = arith.constant dense<0.000000e+00> : vector<8x128xf32>
    %91 = tpu.matmul %69, %2, %cst_27 {dimension_numbers = #tpu.dot_dimension_numbers<[1], [0], [0], [1], [0, 0, 1, 1], [], []>} : vector<8x32xf32>, vector<32x128xf32>, vector<8x128xf32> -> vector<8x128xf32>
    %92 = arith.addf %90, %91 : vector<8x128xf32>
    %93 = arith.negf %92 : vector<8x128xf32>
    %94 = math.exp %93 : vector<8x128xf32>
    %cst_28 = arith.constant 1.000000e+00 : f32
    %95 = vector.broadcast %cst_28 : f32 to vector<8x128xf32>
    %96 = arith.addf %95, %94 : vector<8x128xf32>
    %97 = arith.divf %95, %96 : vector<8x128xf32>
    %98 = vector.extract_strided_slice %92 {offsets = [0, 64], sizes = [8, 32], strides = [1, 1]} : vector<8x128xf32> to vector<8x32xf32>
    %99 = math.tanh %98 : vector<8x32xf32>
    %100 = vector.extract_strided_slice %97 {offsets = [0, 32], sizes = [8, 32], strides = [1, 1]} : vector<8x128xf32> to vector<8x32xf32>
    %101 = arith.mulf %100, %66 : vector<8x32xf32>
    %102 = vector.extract_strided_slice %97 {offsets = [0, 0], sizes = [8, 32], strides = [1, 1]} : vector<8x128xf32> to vector<8x32xf32>
    %103 = arith.mulf %102, %99 : vector<8x32xf32>
    %104 = arith.addf %101, %103 : vector<8x32xf32>
    %105 = vector.extract_strided_slice %97 {offsets = [0, 96], sizes = [8, 32], strides = [1, 1]} : vector<8x128xf32> to vector<8x32xf32>
    %106 = math.tanh %104 : vector<8x32xf32>
    %107 = arith.mulf %105, %106 : vector<8x32xf32>
    %cst_29 = arith.constant dense<0.000000e+00> : vector<8x128xf32>
    %108 = tpu.matmul %107, %1, %cst_29 {dimension_numbers = #tpu.dot_dimension_numbers<[1], [0], [0], [1], [0, 0, 1, 1], [], []>} : vector<8x32xf32>, vector<32x128xf32>, vector<8x128xf32> -> vector<8x128xf32>
    %109 = vector.broadcast %5 : vector<1x128xf32> to vector<8x128xf32>
    %110 = arith.addf %108, %109 : vector<8x128xf32>
    %cst_30 = arith.constant dense<0.000000e+00> : vector<8x128xf32>
    %111 = tpu.matmul %89, %3, %cst_30 {dimension_numbers = #tpu.dot_dimension_numbers<[1], [0], [0], [1], [0, 0, 1, 1], [], []>} : vector<8x32xf32>, vector<32x128xf32>, vector<8x128xf32> -> vector<8x128xf32>
    %112 = arith.addf %110, %111 : vector<8x128xf32>
    %113 = arith.negf %112 : vector<8x128xf32>
    %114 = math.exp %113 : vector<8x128xf32>
    %cst_31 = arith.constant 1.000000e+00 : f32
    %115 = vector.broadcast %cst_31 : f32 to vector<8x128xf32>
    %116 = arith.addf %115, %114 : vector<8x128xf32>
    %117 = arith.divf %115, %116 : vector<8x128xf32>
    %118 = vector.extract_strided_slice %112 {offsets = [0, 64], sizes = [8, 32], strides = [1, 1]} : vector<8x128xf32> to vector<8x32xf32>
    %119 = math.tanh %118 : vector<8x32xf32>
    %120 = vector.extract_strided_slice %117 {offsets = [0, 32], sizes = [8, 32], strides = [1, 1]} : vector<8x128xf32> to vector<8x32xf32>
    %121 = arith.mulf %120, %86 : vector<8x32xf32>
    %122 = vector.extract_strided_slice %117 {offsets = [0, 0], sizes = [8, 32], strides = [1, 1]} : vector<8x128xf32> to vector<8x32xf32>
    %123 = arith.mulf %122, %119 : vector<8x32xf32>
    %124 = arith.addf %121, %123 : vector<8x32xf32>
    %125 = vector.extract_strided_slice %117 {offsets = [0, 96], sizes = [8, 32], strides = [1, 1]} : vector<8x128xf32> to vector<8x32xf32>
    %126 = math.tanh %124 : vector<8x32xf32>
    %127 = arith.mulf %125, %126 : vector<8x32xf32>
    %128 = vector.extract_strided_slice %9 {offsets = [24, 0], sizes = [8, 128], strides = [1, 1]} : vector<64x128xf32> to vector<8x128xf32>
    %cst_32 = arith.constant dense<0.000000e+00> : vector<8x128xf32>
    %129 = tpu.matmul %107, %2, %cst_32 {dimension_numbers = #tpu.dot_dimension_numbers<[1], [0], [0], [1], [0, 0, 1, 1], [], []>} : vector<8x32xf32>, vector<32x128xf32>, vector<8x128xf32> -> vector<8x128xf32>
    %130 = arith.addf %128, %129 : vector<8x128xf32>
    %131 = arith.negf %130 : vector<8x128xf32>
    %132 = math.exp %131 : vector<8x128xf32>
    %cst_33 = arith.constant 1.000000e+00 : f32
    %133 = vector.broadcast %cst_33 : f32 to vector<8x128xf32>
    %134 = arith.addf %133, %132 : vector<8x128xf32>
    %135 = arith.divf %133, %134 : vector<8x128xf32>
    %136 = vector.extract_strided_slice %130 {offsets = [0, 64], sizes = [8, 32], strides = [1, 1]} : vector<8x128xf32> to vector<8x32xf32>
    %137 = math.tanh %136 : vector<8x32xf32>
    %138 = vector.extract_strided_slice %135 {offsets = [0, 32], sizes = [8, 32], strides = [1, 1]} : vector<8x128xf32> to vector<8x32xf32>
    %139 = arith.mulf %138, %104 : vector<8x32xf32>
    %140 = vector.extract_strided_slice %135 {offsets = [0, 0], sizes = [8, 32], strides = [1, 1]} : vector<8x128xf32> to vector<8x32xf32>
    %141 = arith.mulf %140, %137 : vector<8x32xf32>
    %142 = arith.addf %139, %141 : vector<8x32xf32>
    %143 = vector.extract_strided_slice %135 {offsets = [0, 96], sizes = [8, 32], strides = [1, 1]} : vector<8x128xf32> to vector<8x32xf32>
    %144 = math.tanh %142 : vector<8x32xf32>
    %145 = arith.mulf %143, %144 : vector<8x32xf32>
    %cst_34 = arith.constant dense<0.000000e+00> : vector<8x128xf32>
    %146 = tpu.matmul %145, %1, %cst_34 {dimension_numbers = #tpu.dot_dimension_numbers<[1], [0], [0], [1], [0, 0, 1, 1], [], []>} : vector<8x32xf32>, vector<32x128xf32>, vector<8x128xf32> -> vector<8x128xf32>
    %147 = vector.broadcast %5 : vector<1x128xf32> to vector<8x128xf32>
    %148 = arith.addf %146, %147 : vector<8x128xf32>
    %cst_35 = arith.constant dense<0.000000e+00> : vector<8x128xf32>
    %149 = tpu.matmul %127, %3, %cst_35 {dimension_numbers = #tpu.dot_dimension_numbers<[1], [0], [0], [1], [0, 0, 1, 1], [], []>} : vector<8x32xf32>, vector<32x128xf32>, vector<8x128xf32> -> vector<8x128xf32>
    %150 = arith.addf %148, %149 : vector<8x128xf32>
    %151 = arith.negf %150 : vector<8x128xf32>
    %152 = math.exp %151 : vector<8x128xf32>
    %cst_36 = arith.constant 1.000000e+00 : f32
    %153 = vector.broadcast %cst_36 : f32 to vector<8x128xf32>
    %154 = arith.addf %153, %152 : vector<8x128xf32>
    %155 = arith.divf %153, %154 : vector<8x128xf32>
    %156 = vector.extract_strided_slice %150 {offsets = [0, 64], sizes = [8, 32], strides = [1, 1]} : vector<8x128xf32> to vector<8x32xf32>
    %157 = math.tanh %156 : vector<8x32xf32>
    %158 = vector.extract_strided_slice %155 {offsets = [0, 32], sizes = [8, 32], strides = [1, 1]} : vector<8x128xf32> to vector<8x32xf32>
    %159 = arith.mulf %158, %124 : vector<8x32xf32>
    %160 = vector.extract_strided_slice %155 {offsets = [0, 0], sizes = [8, 32], strides = [1, 1]} : vector<8x128xf32> to vector<8x32xf32>
    %161 = arith.mulf %160, %157 : vector<8x32xf32>
    %162 = arith.addf %159, %161 : vector<8x32xf32>
    %163 = vector.extract_strided_slice %155 {offsets = [0, 96], sizes = [8, 32], strides = [1, 1]} : vector<8x128xf32> to vector<8x32xf32>
    %164 = math.tanh %162 : vector<8x32xf32>
    %165 = arith.mulf %163, %164 : vector<8x32xf32>
    %166 = vector.extract_strided_slice %9 {offsets = [32, 0], sizes = [8, 128], strides = [1, 1]} : vector<64x128xf32> to vector<8x128xf32>
    %cst_37 = arith.constant dense<0.000000e+00> : vector<8x128xf32>
    %167 = tpu.matmul %145, %2, %cst_37 {dimension_numbers = #tpu.dot_dimension_numbers<[1], [0], [0], [1], [0, 0, 1, 1], [], []>} : vector<8x32xf32>, vector<32x128xf32>, vector<8x128xf32> -> vector<8x128xf32>
    %168 = arith.addf %166, %167 : vector<8x128xf32>
    %169 = arith.negf %168 : vector<8x128xf32>
    %170 = math.exp %169 : vector<8x128xf32>
    %cst_38 = arith.constant 1.000000e+00 : f32
    %171 = vector.broadcast %cst_38 : f32 to vector<8x128xf32>
    %172 = arith.addf %171, %170 : vector<8x128xf32>
    %173 = arith.divf %171, %172 : vector<8x128xf32>
    %174 = vector.extract_strided_slice %168 {offsets = [0, 64], sizes = [8, 32], strides = [1, 1]} : vector<8x128xf32> to vector<8x32xf32>
    %175 = math.tanh %174 : vector<8x32xf32>
    %176 = vector.extract_strided_slice %173 {offsets = [0, 32], sizes = [8, 32], strides = [1, 1]} : vector<8x128xf32> to vector<8x32xf32>
    %177 = arith.mulf %176, %142 : vector<8x32xf32>
    %178 = vector.extract_strided_slice %173 {offsets = [0, 0], sizes = [8, 32], strides = [1, 1]} : vector<8x128xf32> to vector<8x32xf32>
    %179 = arith.mulf %178, %175 : vector<8x32xf32>
    %180 = arith.addf %177, %179 : vector<8x32xf32>
    %181 = vector.extract_strided_slice %173 {offsets = [0, 96], sizes = [8, 32], strides = [1, 1]} : vector<8x128xf32> to vector<8x32xf32>
    %182 = math.tanh %180 : vector<8x32xf32>
    %183 = arith.mulf %181, %182 : vector<8x32xf32>
    %cst_39 = arith.constant dense<0.000000e+00> : vector<8x128xf32>
    %184 = tpu.matmul %183, %1, %cst_39 {dimension_numbers = #tpu.dot_dimension_numbers<[1], [0], [0], [1], [0, 0, 1, 1], [], []>} : vector<8x32xf32>, vector<32x128xf32>, vector<8x128xf32> -> vector<8x128xf32>
    %185 = vector.broadcast %5 : vector<1x128xf32> to vector<8x128xf32>
    %186 = arith.addf %184, %185 : vector<8x128xf32>
    %cst_40 = arith.constant dense<0.000000e+00> : vector<8x128xf32>
    %187 = tpu.matmul %165, %3, %cst_40 {dimension_numbers = #tpu.dot_dimension_numbers<[1], [0], [0], [1], [0, 0, 1, 1], [], []>} : vector<8x32xf32>, vector<32x128xf32>, vector<8x128xf32> -> vector<8x128xf32>
    %188 = arith.addf %186, %187 : vector<8x128xf32>
    %189 = arith.negf %188 : vector<8x128xf32>
    %190 = math.exp %189 : vector<8x128xf32>
    %cst_41 = arith.constant 1.000000e+00 : f32
    %191 = vector.broadcast %cst_41 : f32 to vector<8x128xf32>
    %192 = arith.addf %191, %190 : vector<8x128xf32>
    %193 = arith.divf %191, %192 : vector<8x128xf32>
    %194 = vector.extract_strided_slice %188 {offsets = [0, 64], sizes = [8, 32], strides = [1, 1]} : vector<8x128xf32> to vector<8x32xf32>
    %195 = math.tanh %194 : vector<8x32xf32>
    %196 = vector.extract_strided_slice %193 {offsets = [0, 32], sizes = [8, 32], strides = [1, 1]} : vector<8x128xf32> to vector<8x32xf32>
    %197 = arith.mulf %196, %162 : vector<8x32xf32>
    %198 = vector.extract_strided_slice %193 {offsets = [0, 0], sizes = [8, 32], strides = [1, 1]} : vector<8x128xf32> to vector<8x32xf32>
    %199 = arith.mulf %198, %195 : vector<8x32xf32>
    %200 = arith.addf %197, %199 : vector<8x32xf32>
    %201 = vector.extract_strided_slice %193 {offsets = [0, 96], sizes = [8, 32], strides = [1, 1]} : vector<8x128xf32> to vector<8x32xf32>
    %202 = math.tanh %200 : vector<8x32xf32>
    %203 = arith.mulf %201, %202 : vector<8x32xf32>
    %204 = vector.extract_strided_slice %9 {offsets = [40, 0], sizes = [8, 128], strides = [1, 1]} : vector<64x128xf32> to vector<8x128xf32>
    %cst_42 = arith.constant dense<0.000000e+00> : vector<8x128xf32>
    %205 = tpu.matmul %183, %2, %cst_42 {dimension_numbers = #tpu.dot_dimension_numbers<[1], [0], [0], [1], [0, 0, 1, 1], [], []>} : vector<8x32xf32>, vector<32x128xf32>, vector<8x128xf32> -> vector<8x128xf32>
    %206 = arith.addf %204, %205 : vector<8x128xf32>
    %207 = arith.negf %206 : vector<8x128xf32>
    %208 = math.exp %207 : vector<8x128xf32>
    %cst_43 = arith.constant 1.000000e+00 : f32
    %209 = vector.broadcast %cst_43 : f32 to vector<8x128xf32>
    %210 = arith.addf %209, %208 : vector<8x128xf32>
    %211 = arith.divf %209, %210 : vector<8x128xf32>
    %212 = vector.extract_strided_slice %206 {offsets = [0, 64], sizes = [8, 32], strides = [1, 1]} : vector<8x128xf32> to vector<8x32xf32>
    %213 = math.tanh %212 : vector<8x32xf32>
    %214 = vector.extract_strided_slice %211 {offsets = [0, 32], sizes = [8, 32], strides = [1, 1]} : vector<8x128xf32> to vector<8x32xf32>
    %215 = arith.mulf %214, %180 : vector<8x32xf32>
    %216 = vector.extract_strided_slice %211 {offsets = [0, 0], sizes = [8, 32], strides = [1, 1]} : vector<8x128xf32> to vector<8x32xf32>
    %217 = arith.mulf %216, %213 : vector<8x32xf32>
    %218 = arith.addf %215, %217 : vector<8x32xf32>
    %219 = vector.extract_strided_slice %211 {offsets = [0, 96], sizes = [8, 32], strides = [1, 1]} : vector<8x128xf32> to vector<8x32xf32>
    %220 = math.tanh %218 : vector<8x32xf32>
    %221 = arith.mulf %219, %220 : vector<8x32xf32>
    %cst_44 = arith.constant dense<0.000000e+00> : vector<8x128xf32>
    %222 = tpu.matmul %221, %1, %cst_44 {dimension_numbers = #tpu.dot_dimension_numbers<[1], [0], [0], [1], [0, 0, 1, 1], [], []>} : vector<8x32xf32>, vector<32x128xf32>, vector<8x128xf32> -> vector<8x128xf32>
    %223 = vector.broadcast %5 : vector<1x128xf32> to vector<8x128xf32>
    %224 = arith.addf %222, %223 : vector<8x128xf32>
    %cst_45 = arith.constant dense<0.000000e+00> : vector<8x128xf32>
    %225 = tpu.matmul %203, %3, %cst_45 {dimension_numbers = #tpu.dot_dimension_numbers<[1], [0], [0], [1], [0, 0, 1, 1], [], []>} : vector<8x32xf32>, vector<32x128xf32>, vector<8x128xf32> -> vector<8x128xf32>
    %226 = arith.addf %224, %225 : vector<8x128xf32>
    %227 = arith.negf %226 : vector<8x128xf32>
    %228 = math.exp %227 : vector<8x128xf32>
    %cst_46 = arith.constant 1.000000e+00 : f32
    %229 = vector.broadcast %cst_46 : f32 to vector<8x128xf32>
    %230 = arith.addf %229, %228 : vector<8x128xf32>
    %231 = arith.divf %229, %230 : vector<8x128xf32>
    %232 = vector.extract_strided_slice %226 {offsets = [0, 64], sizes = [8, 32], strides = [1, 1]} : vector<8x128xf32> to vector<8x32xf32>
    %233 = math.tanh %232 : vector<8x32xf32>
    %234 = vector.extract_strided_slice %231 {offsets = [0, 32], sizes = [8, 32], strides = [1, 1]} : vector<8x128xf32> to vector<8x32xf32>
    %235 = arith.mulf %234, %200 : vector<8x32xf32>
    %236 = vector.extract_strided_slice %231 {offsets = [0, 0], sizes = [8, 32], strides = [1, 1]} : vector<8x128xf32> to vector<8x32xf32>
    %237 = arith.mulf %236, %233 : vector<8x32xf32>
    %238 = arith.addf %235, %237 : vector<8x32xf32>
    %239 = vector.extract_strided_slice %231 {offsets = [0, 96], sizes = [8, 32], strides = [1, 1]} : vector<8x128xf32> to vector<8x32xf32>
    %240 = math.tanh %238 : vector<8x32xf32>
    %241 = arith.mulf %239, %240 : vector<8x32xf32>
    %242 = vector.extract_strided_slice %9 {offsets = [48, 0], sizes = [8, 128], strides = [1, 1]} : vector<64x128xf32> to vector<8x128xf32>
    %cst_47 = arith.constant dense<0.000000e+00> : vector<8x128xf32>
    %243 = tpu.matmul %221, %2, %cst_47 {dimension_numbers = #tpu.dot_dimension_numbers<[1], [0], [0], [1], [0, 0, 1, 1], [], []>} : vector<8x32xf32>, vector<32x128xf32>, vector<8x128xf32> -> vector<8x128xf32>
    %244 = arith.addf %242, %243 : vector<8x128xf32>
    %245 = arith.negf %244 : vector<8x128xf32>
    %246 = math.exp %245 : vector<8x128xf32>
    %cst_48 = arith.constant 1.000000e+00 : f32
    %247 = vector.broadcast %cst_48 : f32 to vector<8x128xf32>
    %248 = arith.addf %247, %246 : vector<8x128xf32>
    %249 = arith.divf %247, %248 : vector<8x128xf32>
    %250 = vector.extract_strided_slice %244 {offsets = [0, 64], sizes = [8, 32], strides = [1, 1]} : vector<8x128xf32> to vector<8x32xf32>
    %251 = math.tanh %250 : vector<8x32xf32>
    %252 = vector.extract_strided_slice %249 {offsets = [0, 32], sizes = [8, 32], strides = [1, 1]} : vector<8x128xf32> to vector<8x32xf32>
    %253 = arith.mulf %252, %218 : vector<8x32xf32>
    %254 = vector.extract_strided_slice %249 {offsets = [0, 0], sizes = [8, 32], strides = [1, 1]} : vector<8x128xf32> to vector<8x32xf32>
    %255 = arith.mulf %254, %251 : vector<8x32xf32>
    %256 = arith.addf %253, %255 : vector<8x32xf32>
    %257 = vector.extract_strided_slice %249 {offsets = [0, 96], sizes = [8, 32], strides = [1, 1]} : vector<8x128xf32> to vector<8x32xf32>
    %258 = math.tanh %256 : vector<8x32xf32>
    %259 = arith.mulf %257, %258 : vector<8x32xf32>
    %cst_49 = arith.constant dense<0.000000e+00> : vector<8x128xf32>
    %260 = tpu.matmul %259, %1, %cst_49 {dimension_numbers = #tpu.dot_dimension_numbers<[1], [0], [0], [1], [0, 0, 1, 1], [], []>} : vector<8x32xf32>, vector<32x128xf32>, vector<8x128xf32> -> vector<8x128xf32>
    %261 = vector.broadcast %5 : vector<1x128xf32> to vector<8x128xf32>
    %262 = arith.addf %260, %261 : vector<8x128xf32>
    %cst_50 = arith.constant dense<0.000000e+00> : vector<8x128xf32>
    %263 = tpu.matmul %241, %3, %cst_50 {dimension_numbers = #tpu.dot_dimension_numbers<[1], [0], [0], [1], [0, 0, 1, 1], [], []>} : vector<8x32xf32>, vector<32x128xf32>, vector<8x128xf32> -> vector<8x128xf32>
    %264 = arith.addf %262, %263 : vector<8x128xf32>
    %265 = arith.negf %264 : vector<8x128xf32>
    %266 = math.exp %265 : vector<8x128xf32>
    %cst_51 = arith.constant 1.000000e+00 : f32
    %267 = vector.broadcast %cst_51 : f32 to vector<8x128xf32>
    %268 = arith.addf %267, %266 : vector<8x128xf32>
    %269 = arith.divf %267, %268 : vector<8x128xf32>
    %270 = vector.extract_strided_slice %264 {offsets = [0, 64], sizes = [8, 32], strides = [1, 1]} : vector<8x128xf32> to vector<8x32xf32>
    %271 = math.tanh %270 : vector<8x32xf32>
    %272 = vector.extract_strided_slice %269 {offsets = [0, 32], sizes = [8, 32], strides = [1, 1]} : vector<8x128xf32> to vector<8x32xf32>
    %273 = arith.mulf %272, %238 : vector<8x32xf32>
    %274 = vector.extract_strided_slice %269 {offsets = [0, 0], sizes = [8, 32], strides = [1, 1]} : vector<8x128xf32> to vector<8x32xf32>
    %275 = arith.mulf %274, %271 : vector<8x32xf32>
    %276 = arith.addf %273, %275 : vector<8x32xf32>
    %277 = vector.extract_strided_slice %269 {offsets = [0, 96], sizes = [8, 32], strides = [1, 1]} : vector<8x128xf32> to vector<8x32xf32>
    %278 = math.tanh %276 : vector<8x32xf32>
    %279 = arith.mulf %277, %278 : vector<8x32xf32>
    %280 = vector.extract_strided_slice %9 {offsets = [56, 0], sizes = [8, 128], strides = [1, 1]} : vector<64x128xf32> to vector<8x128xf32>
    %cst_52 = arith.constant dense<0.000000e+00> : vector<8x128xf32>
    %281 = tpu.matmul %259, %2, %cst_52 {dimension_numbers = #tpu.dot_dimension_numbers<[1], [0], [0], [1], [0, 0, 1, 1], [], []>} : vector<8x32xf32>, vector<32x128xf32>, vector<8x128xf32> -> vector<8x128xf32>
    %282 = arith.addf %280, %281 : vector<8x128xf32>
    %283 = arith.negf %282 : vector<8x128xf32>
    %284 = math.exp %283 : vector<8x128xf32>
    %cst_53 = arith.constant 1.000000e+00 : f32
    %285 = vector.broadcast %cst_53 : f32 to vector<8x128xf32>
    %286 = arith.addf %285, %284 : vector<8x128xf32>
    %287 = arith.divf %285, %286 : vector<8x128xf32>
    %288 = vector.extract_strided_slice %282 {offsets = [0, 64], sizes = [8, 32], strides = [1, 1]} : vector<8x128xf32> to vector<8x32xf32>
    %289 = math.tanh %288 : vector<8x32xf32>
    %290 = vector.extract_strided_slice %287 {offsets = [0, 32], sizes = [8, 32], strides = [1, 1]} : vector<8x128xf32> to vector<8x32xf32>
    %291 = arith.mulf %290, %256 : vector<8x32xf32>
    %292 = vector.extract_strided_slice %287 {offsets = [0, 0], sizes = [8, 32], strides = [1, 1]} : vector<8x128xf32> to vector<8x32xf32>
    %293 = arith.mulf %292, %289 : vector<8x32xf32>
    %294 = arith.addf %291, %293 : vector<8x32xf32>
    %295 = vector.extract_strided_slice %287 {offsets = [0, 96], sizes = [8, 32], strides = [1, 1]} : vector<8x128xf32> to vector<8x32xf32>
    %296 = math.tanh %294 : vector<8x32xf32>
    %297 = arith.mulf %295, %296 : vector<8x32xf32>
    %cst_54 = arith.constant dense<0.000000e+00> : vector<8x128xf32>
    %298 = tpu.matmul %297, %1, %cst_54 {dimension_numbers = #tpu.dot_dimension_numbers<[1], [0], [0], [1], [0, 0, 1, 1], [], []>} : vector<8x32xf32>, vector<32x128xf32>, vector<8x128xf32> -> vector<8x128xf32>
    %299 = vector.broadcast %5 : vector<1x128xf32> to vector<8x128xf32>
    %300 = arith.addf %298, %299 : vector<8x128xf32>
    %cst_55 = arith.constant dense<0.000000e+00> : vector<8x128xf32>
    %301 = tpu.matmul %279, %3, %cst_55 {dimension_numbers = #tpu.dot_dimension_numbers<[1], [0], [0], [1], [0, 0, 1, 1], [], []>} : vector<8x32xf32>, vector<32x128xf32>, vector<8x128xf32> -> vector<8x128xf32>
    %302 = arith.addf %300, %301 : vector<8x128xf32>
    %303 = arith.negf %302 : vector<8x128xf32>
    %304 = math.exp %303 : vector<8x128xf32>
    %cst_56 = arith.constant 1.000000e+00 : f32
    %305 = vector.broadcast %cst_56 : f32 to vector<8x128xf32>
    %306 = arith.addf %305, %304 : vector<8x128xf32>
    %307 = arith.divf %305, %306 : vector<8x128xf32>
    %308 = vector.extract_strided_slice %302 {offsets = [0, 64], sizes = [8, 32], strides = [1, 1]} : vector<8x128xf32> to vector<8x32xf32>
    %309 = math.tanh %308 : vector<8x32xf32>
    %310 = vector.extract_strided_slice %307 {offsets = [0, 32], sizes = [8, 32], strides = [1, 1]} : vector<8x128xf32> to vector<8x32xf32>
    %311 = arith.mulf %310, %276 : vector<8x32xf32>
    %312 = vector.extract_strided_slice %307 {offsets = [0, 0], sizes = [8, 32], strides = [1, 1]} : vector<8x128xf32> to vector<8x32xf32>
    %313 = arith.mulf %312, %309 : vector<8x32xf32>
    %314 = arith.addf %311, %313 : vector<8x32xf32>
    %315 = vector.extract_strided_slice %307 {offsets = [0, 96], sizes = [8, 32], strides = [1, 1]} : vector<8x128xf32> to vector<8x32xf32>
    %316 = math.tanh %314 : vector<8x32xf32>
    %317 = arith.mulf %315, %316 : vector<8x32xf32>
    %c0_57 = arith.constant 0 : index
    %c0_58 = arith.constant 0 : index
    %318 = vector.load %arg7[%c0_57, %c0_58] : memref<32x1xf32, #tpu.memory_space<vmem>>, vector<32x1xf32>
    %cst_59 = arith.constant dense<0.000000e+00> : vector<8x1xf32>
    %319 = tpu.matmul %317, %318, %cst_59 {dimension_numbers = #tpu.dot_dimension_numbers<[1], [0], [0], [1], [0, 0, 1, 1], [], []>} : vector<8x32xf32>, vector<32x1xf32>, vector<8x1xf32> -> vector<8x1xf32>
    %c0_60 = arith.constant 0 : index
    %c0_61 = arith.constant 0 : index
    %320 = vector.load %arg8[%c0_60, %c0_61] : memref<1x1xf32, #tpu.memory_space<vmem>>, vector<1x1xf32>
    %321 = vector.broadcast %320 : vector<1x1xf32> to vector<8x1xf32>
    %322 = arith.addf %319, %321 : vector<8x1xf32>
    %c0_62 = arith.constant 0 : index
    %c0_63 = arith.constant 0 : index
    %323 = vector.load %arg9[%c0_62, %c0_63] : memref<8x1xf32, #tpu.memory_space<vmem>>, vector<8x1xf32>
    tpu.vector_store %arg9[%c0_62, %c0_63], %322 {strides = array<i32>} : memref<8x1xf32, #tpu.memory_space<vmem>>, vector<8x1xf32>,
    return
  }
}

</mosaic_0001>

<bundles_post_ra>
// kernel: tpu_custom_call.1
= control target key start
LH: loop header
LB: loop body
LE: loop exit
PB: predicated region body
PF: predicated region fallthrough
CT: control target
= control target key end

     0   :  { %vm63_vm0 = vcmask 64512   ;;  %v3230_v0 = vmov 0.0|0.0   ;;  %vm3231_vm1 = vmmov 0   ;;  %v3232_v4 = vmov 0.0   ;;  %s3233_s23 = smov 64   ;;  %s3722_s2 = inlined_call_operand.vmem [shape: f32[32,128], index: 2, kind: input, shape index: {}]   ;;  %s3723_s1 = inlined_call_operand.vmem [shape: f32[8,128], index: 1, kind: input, shape index: {}]   ;;  %s3724_s0 = inlined_call_operand.vmem [shape: f32[64,8], index: 0, kind: input, shape index: {}]   ;;  %s3725_s3 = inlined_call_operand.vmem [shape: f32[1,128], index: 3, kind: input, shape index: {}]   ;;  %s3726_s4 = inlined_call_operand.vmem [shape: f32[32,128], index: 4, kind: input, shape index: {}]   ;;  %s3727_s5 = inlined_call_operand.vmem [shape: f32[32,128], index: 5, kind: input, shape index: {}]   ;;  %s3728_s6 = inlined_call_operand.vmem [shape: f32[1,128], index: 6, kind: input, shape index: {}]   ;;  %s3729_s7 = inlined_call_operand.vmem [shape: f32[32,1], index: 7, kind: input, shape index: {}]   ;;  %s3730_s8 = inlined_call_operand.<no memory space> [shape: f32[1,1], index: 8, kind: input, shape index: {}]   ;;  %s3731_s9 = inlined_call_operand.vmem [shape: f32[8,1], index: 9, kind: output, shape index: {}]  }
   0x1   :  { %2923 = vmatprep.subr.bf16.mxu1 %v3230_v0  ;;  %v39_v1 = vld [vmem:[%s3722_s2] sm:$0xff]  ;;  %v40_v2 = vld [vmem:[%s3722_s2 + $0x8] sm:$0xff]  ;;  %2656 = vmatprep.mubr.msk.f32.mxu1 %vm3231_vm1, %v3232_v4  ;;  %v41_v8 = vld [vmem:[%s3722_s2 + $0x10] sm:$0xff]  ;;  %vm193_vm2 = vcmask 261120   ;;  %vm2444_vm3 = vcmask 7168  }
   0x2   :  { %v34_v3 = vld [vmem:[%s3723_s1] sm:$0xff]  ;;  %v3297_v5 = vpack.c.bf16 %v40_v2, %v39_v1  ;;  %v50_v7 = vld [vmem:[%s3724_s0 + $0x8] sm:$0xff]  ;;  %v42_v9 = vld [vmem:[%s3722_s2 + $0x18] sm:$0xff] }
   0x3   :  { %2634 = vmatprep.subr.mxu0 %v34_v3  ;;  %v49_v6 = vld [vmem:[%s3724_s0] sm:$0xff]  ;;  %v3314_v10 = vpack.c.bf16 %v42_v9, %v41_v8  ;;  %v51_v28 = vld [vmem:[%s3724_s0 + $0x10] sm:$0xff]  ;;  %v52_v29 = vld [vmem:[%s3724_s0 + $0x18] sm:$0xff] }
   0x4   :  { %2635 = vmatpush3.msra.mxu0 %v34_v3  ;;  %2636 = vmatprep.mubr.msk.f32.mxu0 %vm63_vm0, %v49_v6  ;;  %v3332_v12 = vld [vmem:[%s3725_s3] ss:$0 sm:$0xff]  ;;  %s3234_s3 = smov 32   ;;  %v36_v32 = vld [vmem:[%s3726_s4 + $0x8] sm:$0xff]  ;;  %v37_v34 = vld [vmem:[%s3726_s4 + $0x10] sm:$0xff] }
   0x5   :  { %2925 = vmatpush3.bf16.msra.mxu1 %v3297_v5  ;;  %2637 = vmatmul.mubr.msk.f32.vlgmr.msra.gmra.mrb[0].mxu0 %vm63_vm0, %v50_v7  ;;  %v53_v30 = vld [vmem:[%s3724_s0 + $0x20] sm:$0xff]  ;;  %v54_v35 = vld [vmem:[%s3724_s0 + $0x28] sm:$0xff]  ;;  %v38_v36 = vld [vmem:[%s3726_s4 + $0x18] sm:$0xff] }
   0x6   :  { %2926 = vmatprep.subr.bf16.mxu1 %v3230_v0  ;;  %2941 = vmatprep.subr.bf16.mxu0 %v3230_v0  ;;  %v35_v31 = vld [vmem:[%s3726_s4] sm:$0xff]  ;;  %v55_v37 = vld [vmem:[%s3724_s0 + $0x30] sm:$0xff]  ;;  %v3373_v38 = vpack.c.bf16 %v38_v36, %v37_v34  ;;  %v56_v39 = vld [vmem:[%s3724_s0 + $0x38] sm:$0xff] }
   0x7   :  { %2943 = vmatpush3.bf16.msra.mxu0 %v3297_v5  ;;  %2639 = vmatprep.mubr.msk.f32.mxu0 %vm63_vm0, %v51_v28  ;;  %v3357_v33 = vpack.c.bf16 %v36_v32, %v35_v31  ;;  %v43_v49 = vld [vmem:[%s3727_s5] sm:$0xff]  ;;  %v44_v50 = vld [vmem:[%s3727_s5 + $0x8] sm:$0xff]  ;;  %v45_v52 = vld [vmem:[%s3727_s5 + $0x10] sm:$0xff] }
   0x8   :  { %2944 = vmatprep.subr.bf16.mxu0 %v3230_v0  ;;  %v3406_v51 = vpack.c.bf16 %v44_v50, %v43_v49  ;;  %v46_v53 = vld [vmem:[%s3727_s5 + $0x18] sm:$0xff]  ;;  %v3442_v60 = vld [vmem:[%s3728_s6] ss:$0 sm:$0xff] }
   0x9   :  { %2928 = vmatpush3.bf16.msra.mxu1 %v3314_v10  ;;  %2640 = vmatmul.mubr.msk.f32.gmra.mrb[2].mxu0 %vm63_vm0, %v52_v29  ;;  %v3417_v55 = vpack.c.bf16 %v46_v53, %v45_v52 }
   0xa   :  { %2929 = vmatprep.subr.bf16.mxu1 %v3230_v0  ;;  %2642 = vmatprep.mubr.msk.f32.mxu0 %vm63_vm0, %v53_v30 }
   0xb   :  { %2946 = vmatpush3.bf16.msra.mxu0 %v3314_v10 }
   0xc   :  { %2657 = vmatmul.mubr.f32.vlgmr.msra.gmra.mrb[0].mxu1 %v3232_v4  ;;  %2947 = vmatprep.subr.bf16.mxu0 %v3230_v0 }
   0xd   :  { %2667 = vmatprep.mubr.msk.f32.mxu1 %vm3231_vm1, %v3232_v4  ;;  %2931 = vmatpush3.bf16.msra.mxu1 %v3357_v33 }
   0xe   :  { %2932 = vmatprep.subr.bf16.mxu1 %v3230_v0  ;;  %2643 = vmatmul.mubr.msk.f32.gmra.mrb[4].mxu0 %vm63_vm0, %v54_v35 }
   0xf   :  { %2645 = vmatprep.mubr.msk.f32.mxu0 %vm63_vm0, %v55_v37 }
  0x11   :  { %2934 = vmatpush3.bf16.msra.mxu1 %v3373_v38 }
  0x12   :  { %2935 = vmatprep.subr.bf16.mxu1 %v3230_v0  ;;  %2646 = vmatmul.mubr.msk.f32.gmra.mrb[6].mxu0 %vm63_vm0, %v56_v39 }
  0x13   :  { %2689 = vmatprep.mubr.msk.f32.mxu0 %vm3231_vm1, %v3232_v4 }
  0xd8   :  { %v3327_v11 = vpop.f32.mrb[0].mxu0 }
  0xd9   :  { %v154_v13 = vpop.f32.mrb[1].mxu0  ;;  %v160_v56 = vadd.f32 %v3327_v11, %v3332_v12 }
  0xda   :  { %v155_v14 = vadd.f32 %v3332_v12, %v154_v13 }
  0xdc   :  { %v3388_v43 = vpop.f32.mrb[2].mxu0 }
  0xdd   :  { %v3390_v44 = vpop.f32.mrb[3].mxu0 }
  0xde   :  { %v165_v34 = vadd.f32 %v3332_v12, %v3390_v44 }
  0xdf   :  { %v263_v15 = vpop.f32.mrb[0].mxu1 }
  0xe0   :  { %v267_v16 = vadd.f32 %v263_v15, %v155_v14  ;;  %v2658_v17 = vpop.f32.mrb[1].mxu1 }
  0xe1   :  { %v3392_v45 = vpop.f32.mrb[4].mxu0 }
  0xe2   :  { %3102 = vtanh.f32 %v267_v16  ;;  %v2459_v19 = vmul.f32 -1.442695, %v267_v16  ;;  %v3394_v46 = vpop.f32.mrb[5].mxu0 }
  0xe4   :  { %3104 = vpow2.f32 %v2459_v19 }
  0xe5   :  { %v3396_v47 = vpop.f32.mrb[6].mxu0 }
  0xe6   :  { %v3398_v48 = vpop.f32.mrb[7].mxu0 }
  0xec   :  { %v3103_v18 = vpop.eup %3102 }
  0xed   :  { %277 = vrot.lane.b32.xlu0 %v3103_v18, %s3233_s23 }
  0xee   :  { %v3105_v20 = vpop.eup %3104 }
  0xef   :  { %v271_v21 = vadd.f32 1.0, %v3105_v20 }
  0xf1   :  { %3106 = vrcp.f32 %v271_v21 }
  0xfb   :  { %v3107_v22 = vpop.eup %3106 }
  0xfc   :  { %v275_v25 = vmul.f32 0.0, %v3107_v22 }
 0x15f   :  { %v278_v23 = vpop.permute.xlu0 %277 }
 0x160   :  { %v280_v24 = vmul.f32 %v3107_v22, %v278_v23 }
 0x162   :  { %282 = vrot.lane.b32.xlu0 %v280_v24, %s3234_s3 }
 0x1d4   :  { %v283_v26 = vpop.permute.xlu0 %282 }
 0x1d5   :  { %v3337_v27 = vadd.f32 %v283_v26, %v275_v25 }
 0x1d7   :  { %3108 = vtanh.f32 %v3337_v27 }
 0x1e1   :  { %v3109_v40 = vpop.eup %3108 }
 0x1e2   :  { %288 = vrot.lane.b32.xlu1 %v3109_v40, %s3233_s23 }
 0x254   :  { %v289_v41 = vpop.permute.xlu1 %288 }
 0x255   :  { %v291_v42 = vmul.f32 %v3107_v22, %v289_v41 }
 0x257   :  { %299 = vrot.lane.b32.xlu1 %v291_v42, %s3234_s3 }
 0x2c9   :  { %v300_v54 = vpop.permute.xlu1 %299 }
 0x2ca   :  { %2668 = vmatmul.mubr.msk.f32.vlgmr.msra.gmra.mrb[2].mxu1 %vm193_vm2, %v300_v54  ;;  %2690 = vmatmul.mubr.msk.f32.vlgmr.msra.gmra.mrb[8].mxu0 %vm193_vm2, %v300_v54 }
 0x2cb   :  { %2937 = vmatpush3.bf16.msra.mxu1 %v3406_v51  ;;  %2678 = vmatprep.mubr.msk.f32.mxu1 %vm3231_vm1, %v3232_v4 }
 0x2cc   :  { %2938 = vmatprep.subr.bf16.mxu1 %v3230_v0  ;;  %2949 = vmatpush3.bf16.msra.mxu0 %v3357_v33 }
 0x2cd   :  { %2950 = vmatprep.subr.bf16.mxu0 %v3230_v0  ;;  %2700 = vmatprep.mubr.msk.f32.mxu0 %vm3231_vm1, %v3232_v4 }
 0x2cf   :  { %2940 = vmatpush3.bf16.msra.mxu1 %v3417_v55 }
 0x2d0   :  { %2959 = vmatprep.subr.bf16.mxu1 %v3230_v0  ;;  %2952 = vmatpush3.bf16.msra.mxu0 %v3373_v38 }
 0x2d1   :  { %2953 = vmatprep.subr.bf16.mxu0 %v3230_v0 }
 0x2d2   :  { %2679 = vmatmul.mubr.f32.vlgmr.msra.gmra.mrb[2].mxu1 %v3232_v4 }
 0x2d3   :  { %2961 = vmatpush3.bf16.msra.mxu1 %v3297_v5  ;;  %2722 = vmatprep.mubr.msk.f32.mxu1 %vm3231_vm1, %v3232_v4 }
 0x2d4   :  { %2962 = vmatprep.subr.bf16.mxu1 %v3230_v0 }
 0x2d7   :  { %2964 = vmatpush3.bf16.msra.mxu1 %v3314_v10 }
 0x2d8   :  { %2965 = vmatprep.subr.bf16.mxu1 %v3230_v0 }
 0x39d   :  { %v534_v57 = vpop.f32.mrb[8].mxu0 }
 0x39e   :  { %v538_v58 = vadd.f32 %v534_v57, %v160_v56  ;;  %v2691_v59 = vpop.f32.mrb[9].mxu0 }
 0x3a0   :  { %3110 = vtanh.f32 %v538_v58  ;;  %v2464_v3 = vmul.f32 -1.442695, %v538_v58 }
 0x3a5   :  { %v439_v61 = vpop.f32.mrb[2].mxu1 }
 0x3a6   :  { %v3073_v62 = vadd.f32 %v3442_v60, %v439_v61  ;;  %v2680_v63 = vpop.f32.mrb[3].mxu1 }
 0x3a8   :  { %3112 = vtanh.f32 %v3073_v62  ;;  %v2462_v6 = vmul.f32 -1.442695, %v3073_v62 }
 0x3a9   :  { %3114 = vpow2.f32 %v2464_v3 }
 0x3aa   :  { %v3111_v1 = vpop.eup %3110  ;;  %3116 = vpow2.f32 %v2462_v6 }
 0x3ab   :  { %548 = vrot.lane.b32.xlu0 %v3111_v1, %s3233_s23 }
 0x3b2   :  { %v3113_v2 = vpop.eup %3112 }
 0x3b3   :  { %453 = vrot.lane.b32.xlu1 %v3113_v2, %s3233_s23  ;;  %v3115_v7 = vpop.eup %3114 }
 0x3b4   :  { %v542_v8 = vadd.f32 1.0, %v3115_v7  ;;  %v3117_v9 = vpop.eup %3116 }
 0x3b5   :  { %v447_v11 = vadd.f32 1.0, %v3117_v9 }
 0x3b6   :  { %3118 = vrcp.f32 %v542_v8 }
 0x3b7   :  { %3120 = vrcp.f32 %v447_v11 }
 0x3c0   :  { %v3119_v13 = vpop.eup %3118 }
 0x3c1   :  { %v3121_v16 = vpop.eup %3120  ;;  %v546_v19 = vmul.f32 %v3119_v13, %v3337_v27 }
 0x3c2   :  { %v451_v22 = vmul.f32 0.0, %v3121_v16 }
 0x41d   :  { %v549_v14 = vpop.permute.xlu0 %548 }
 0x41e   :  { %v551_v15 = vmul.f32 %v3119_v13, %v549_v14 }
 0x420   :  { %553 = vrot.lane.b32.xlu0 %v551_v15, %s3234_s3 }
 0x425   :  { %v454_v17 = vpop.permute.xlu1 %453 }
 0x426   :  { %v456_v18 = vmul.f32 %v3121_v16, %v454_v17 }
 0x428   :  { %458 = vrot.lane.b32.xlu1 %v456_v18, %s3234_s3 }
 0x492   :  { %v554_v20 = vpop.permute.xlu0 %553 }
 0x493   :  { %v3450_v21 = vadd.f32 %v554_v20, %v546_v19  ;;  %v170_v19 = vadd.f32 %v3388_v43, %v3332_v12 }
 0x495   :  { %3122 = vtanh.f32 %v3450_v21 }
 0x49a   :  { %v459_v23 = vpop.permute.xlu1 %458 }
 0x49b   :  { %v3453_v24 = vadd.f32 %v459_v23, %v451_v22 }
 0x49d   :  { %3124 = vtanh.f32 %v3453_v24 }
 0x49f   :  { %v3123_v25 = vpop.eup %3122 }
 0x4a0   :  { %559 = vrot.lane.b32.xlu0 %v3123_v25, %s3233_s23 }
 0x4a7   :  { %v3125_v26 = vpop.eup %3124 }
 0x4a8   :  { %464 = vrot.lane.b32.xlu1 %v3125_v26, %s3233_s23 }
 0x512   :  { %v560_v28 = vpop.permute.xlu0 %559 }
 0x513   :  { %v562_v29 = vmul.f32 %v3119_v13, %v560_v28 }
 0x515   :  { %564 = vrot.lane.b32.xlu0 %v562_v29, %s3234_s3 }
 0x51a   :  { %v465_v27 = vpop.permute.xlu1 %464 }
 0x51b   :  { %v467_v30 = vmul.f32 %v3121_v16, %v465_v27 }
 0x51d   :  { %639 = vrot.lane.b32.xlu1 %v467_v30, %s3234_s3 }
 0x587   :  { %v565_v31 = vpop.permute.xlu0 %564 }
 0x588   :  { %2701 = vmatmul.mubr.msk.f32.vlgmr.msra.gmra.mrb[10].mxu0 %vm193_vm2, %v565_v31  ;;  %2723 = vmatmul.mubr.msk.f32.vlgmr.msra.gmra.mrb[4].mxu1 %vm193_vm2, %v565_v31 }
 0x589   :  { %2955 = vmatpush3.bf16.msra.mxu0 %v3406_v51  ;;  %2711 = vmatprep.mubr.msk.f32.mxu0 %vm3231_vm1, %v3232_v4 }
 0x58a   :  { %2956 = vmatprep.subr.bf16.mxu0 %v3230_v0  ;;  %2967 = vmatpush3.bf16.msra.mxu1 %v3357_v33 }
 0x58b   :  { %2968 = vmatprep.subr.bf16.mxu1 %v3230_v0  ;;  %2733 = vmatprep.mubr.msk.f32.mxu1 %vm3231_vm1, %v3232_v4 }
 0x58d   :  { %2958 = vmatpush3.bf16.msra.mxu0 %v3417_v55 }
 0x58e   :  { %2977 = vmatprep.subr.bf16.mxu0 %v3230_v0  ;;  %2970 = vmatpush3.bf16.msra.mxu1 %v3373_v38 }
 0x58f   :  { %v640_v32 = vpop.permute.xlu1 %639  ;;  %2971 = vmatprep.subr.bf16.mxu1 %v3230_v0 }
 0x590   :  { %2712 = vmatmul.mubr.msk.f32.vlgmr.msra.gmra.mrb[10].mxu0 %vm193_vm2, %v640_v32 }
 0x591   :  { %2979 = vmatpush3.bf16.msra.mxu0 %v3297_v5  ;;  %2755 = vmatprep.mubr.msk.f32.mxu0 %vm3231_vm1, %v3232_v4 }
 0x592   :  { %2980 = vmatprep.subr.bf16.mxu0 %v3230_v0 }
 0x595   :  { %2982 = vmatpush3.bf16.msra.mxu0 %v3314_v10 }
 0x596   :  { %2983 = vmatprep.subr.bf16.mxu0 %v3230_v0 }
 0x65b   :  { %v804_v35 = vpop.f32.mrb[4].mxu1 }
 0x65c   :  { %v808_v36 = vadd.f32 %v804_v35, %v165_v34  ;;  %v2724_v37 = vpop.f32.mrb[5].mxu1 }
 0x65e   :  { %3126 = vtanh.f32 %v808_v36  ;;  %v2469_v50 = vmul.f32 -1.442695, %v808_v36 }
 0x663   :  { %v709_v39 = vpop.f32.mrb[10].mxu0 }
 0x664   :  { %v3074_v40 = vadd.f32 %v3442_v60, %v709_v39  ;;  %v2713_v41 = vpop.f32.mrb[11].mxu0 }
 0x666   :  { %3128 = vtanh.f32 %v3074_v40  ;;  %v2467_v52 = vmul.f32 -1.442695, %v3074_v40 }
 0x667   :  { %3130 = vpow2.f32 %v2469_v50 }
 0x668   :  { %v3127_v42 = vpop.eup %3126  ;;  %3132 = vpow2.f32 %v2467_v52 }
 0x669   :  { %818 = vrot.lane.b32.xlu0 %v3127_v42, %s3233_s23 }
 0x670   :  { %v3129_v49 = vpop.eup %3128 }
 0x671   :  { %723 = vrot.lane.b32.xlu1 %v3129_v49, %s3233_s23  ;;  %v3131_v44 = vpop.eup %3130 }
 0x672   :  { %v812_v53 = vadd.f32 1.0, %v3131_v44  ;;  %v3133_v54 = vpop.eup %3132 }
 0x673   :  { %v717_v56 = vadd.f32 1.0, %v3133_v54 }
 0x674   :  { %3134 = vrcp.f32 %v812_v53 }
 0x675   :  { %3136 = vrcp.f32 %v717_v56 }
 0x67e   :  { %v3135_v57 = vpop.eup %3134 }
 0x67f   :  { %v3137_v61 = vpop.eup %3136  ;;  %v816_v1 = vmul.f32 %v3135_v57, %v3450_v21 }
 0x680   :  { %v721_v6 = vmul.f32 %v3137_v61, %v3453_v24 }
 0x6db   :  { %v819_v58 = vpop.permute.xlu0 %818 }
 0x6dc   :  { %v821_v59 = vmul.f32 %v3135_v57, %v819_v58 }
 0x6de   :  { %823 = vrot.lane.b32.xlu0 %v821_v59, %s3234_s3 }
 0x6e3   :  { %v724_v62 = vpop.permute.xlu1 %723 }
 0x6e4   :  { %v726_v63 = vmul.f32 %v3137_v61, %v724_v62 }
 0x6e6   :  { %728 = vrot.lane.b32.xlu1 %v726_v63, %s3234_s3  ;;  %v175_v63 = vadd.f32 %v3332_v12, %v3394_v46 }
 0x750   :  { %v824_v2 = vpop.permute.xlu0 %823 }
 0x751   :  { %v3489_v3 = vadd.f32 %v824_v2, %v816_v1 }
 0x753   :  { %3138 = vtanh.f32 %v3489_v3 }
 0x758   :  { %v729_v7 = vpop.permute.xlu1 %728 }
 0x759   :  { %v3493_v8 = vadd.f32 %v729_v7, %v721_v6 }
 0x75b   :  { %3140 = vtanh.f32 %v3493_v8 }
 0x75d   :  { %v3139_v9 = vpop.eup %3138 }
 0x75e   :  { %829 = vrot.lane.b32.xlu0 %v3139_v9, %s3233_s23 }
 0x765   :  { %v3141_v11 = vpop.eup %3140 }
 0x766   :  { %734 = vrot.lane.b32.xlu1 %v3141_v11, %s3233_s23 }
 0x7d0   :  { %v830_v13 = vpop.permute.xlu0 %829 }
 0x7d1   :  { %v832_v14 = vmul.f32 %v3135_v57, %v830_v13 }
 0x7d3   :  { %834 = vrot.lane.b32.xlu0 %v832_v14, %s3234_s3 }
 0x7d8   :  { %v735_v15 = vpop.permute.xlu1 %734 }
 0x7d9   :  { %v737_v16 = vmul.f32 %v3137_v61, %v735_v15 }
 0x7db   :  { %909 = vrot.lane.b32.xlu1 %v737_v16, %s3234_s3 }
 0x845   :  { %v835_v17 = vpop.permute.xlu0 %834 }
 0x846   :  { %2734 = vmatmul.mubr.msk.f32.vlgmr.msra.gmra.mrb[6].mxu1 %vm193_vm2, %v835_v17  ;;  %2756 = vmatmul.mubr.msk.f32.vlgmr.msra.gmra.mrb[12].mxu0 %vm193_vm2, %v835_v17 }
 0x847   :  { %2973 = vmatpush3.bf16.msra.mxu1 %v3406_v51  ;;  %2744 = vmatprep.mubr.msk.f32.mxu1 %vm3231_vm1, %v3232_v4 }
 0x848   :  { %2974 = vmatprep.subr.bf16.mxu1 %v3230_v0  ;;  %2985 = vmatpush3.bf16.msra.mxu0 %v3357_v33 }
 0x849   :  { %2986 = vmatprep.subr.bf16.mxu0 %v3230_v0  ;;  %2766 = vmatprep.mubr.msk.f32.mxu0 %vm3231_vm1, %v3232_v4 }
 0x84b   :  { %2976 = vmatpush3.bf16.msra.mxu1 %v3417_v55 }
 0x84c   :  { %2995 = vmatprep.subr.bf16.mxu1 %v3230_v0  ;;  %2988 = vmatpush3.bf16.msra.mxu0 %v3373_v38 }
 0x84d   :  { %v910_v18 = vpop.permute.xlu1 %909  ;;  %2989 = vmatprep.subr.bf16.mxu0 %v3230_v0 }
 0x84e   :  { %2745 = vmatmul.mubr.msk.f32.vlgmr.msra.gmra.mrb[6].mxu1 %vm193_vm2, %v910_v18 }
 0x84f   :  { %2997 = vmatpush3.bf16.msra.mxu1 %v3297_v5  ;;  %2788 = vmatprep.mubr.msk.f32.mxu1 %vm3231_vm1, %v3232_v4 }
 0x850   :  { %2998 = vmatprep.subr.bf16.mxu1 %v3230_v0 }
 0x853   :  { %3000 = vmatpush3.bf16.msra.mxu1 %v3314_v10 }
 0x854   :  { %3001 = vmatprep.subr.bf16.mxu1 %v3230_v0 }
 0x919   :  { %v1074_v20 = vpop.f32.mrb[12].mxu0 }
 0x91a   :  { %v1078_v21 = vadd.f32 %v1074_v20, %v170_v19  ;;  %v2757_v22 = vpop.f32.mrb[13].mxu0 }
 0x91c   :  { %3142 = vtanh.f32 %v1078_v21  ;;  %v2474_v29 = vmul.f32 -1.442695, %v1078_v21 }
 0x921   :  { %v979_v23 = vpop.f32.mrb[6].mxu1 }
 0x922   :  { %v3075_v24 = vadd.f32 %v3442_v60, %v979_v23  ;;  %v2746_v25 = vpop.f32.mrb[7].mxu1 }
 0x924   :  { %3144 = vtanh.f32 %v3075_v24  ;;  %v2472_v27 = vmul.f32 -1.442695, %v3075_v24 }
 0x925   :  { %3146 = vpow2.f32 %v2474_v29 }
 0x926   :  { %v3143_v26 = vpop.eup %3142  ;;  %3148 = vpow2.f32 %v2472_v27 }
 0x927   :  { %1088 = vrot.lane.b32.xlu0 %v3143_v26, %s3233_s23 }
 0x92e   :  { %v3145_v28 = vpop.eup %3144 }
 0x92f   :  { %993 = vrot.lane.b32.xlu1 %v3145_v28, %s3233_s23  ;;  %v3147_v43 = vpop.eup %3146 }
 0x930   :  { %v1082_v30 = vadd.f32 1.0, %v3147_v43  ;;  %v3149_v31 = vpop.eup %3148 }
 0x931   :  { %v987_v32 = vadd.f32 1.0, %v3149_v31 }
 0x932   :  { %3150 = vrcp.f32 %v1082_v30 }
 0x933   :  { %3152 = vrcp.f32 %v987_v32 }
 0x93c   :  { %v3151_v34 = vpop.eup %3150 }
 0x93d   :  { %v3153_v37 = vpop.eup %3152  ;;  %v1086_v41 = vmul.f32 %v3151_v34, %v3489_v3 }
 0x93e   :  { %v991_v50 = vmul.f32 %v3153_v37, %v3493_v8 }
 0x999   :  { %v1089_v35 = vpop.permute.xlu0 %1088 }
 0x99a   :  { %v1091_v36 = vmul.f32 %v3151_v34, %v1089_v35 }
 0x99c   :  { %1093 = vrot.lane.b32.xlu0 %v1091_v36, %s3234_s3 }
 0x9a1   :  { %v994_v39 = vpop.permute.xlu1 %993 }
 0x9a2   :  { %v996_v40 = vmul.f32 %v3153_v37, %v994_v39  ;;  %v180_v39 = vadd.f32 %v3392_v45, %v3332_v12 }
 0x9a4   :  { %998 = vrot.lane.b32.xlu1 %v996_v40, %s3234_s3 }
 0xa0e   :  { %v1094_v42 = vpop.permute.xlu0 %1093 }
 0xa0f   :  { %v3529_v49 = vadd.f32 %v1094_v42, %v1086_v41 }
 0xa11   :  { %3154 = vtanh.f32 %v3529_v49 }
 0xa16   :  { %v999_v52 = vpop.permute.xlu1 %998 }
 0xa17   :  { %v3533_v44 = vadd.f32 %v999_v52, %v991_v50 }
 0xa19   :  { %3156 = vtanh.f32 %v3533_v44 }
 0xa1b   :  { %v3155_v53 = vpop.eup %3154 }
 0xa1c   :  { %1099 = vrot.lane.b32.xlu0 %v3155_v53, %s3233_s23 }
 0xa23   :  { %v3157_v54 = vpop.eup %3156 }
 0xa24   :  { %1004 = vrot.lane.b32.xlu1 %v3157_v54, %s3233_s23 }
 0xa8e   :  { %v1100_v56 = vpop.permute.xlu0 %1099 }
 0xa8f   :  { %v1102_v57 = vmul.f32 %v3151_v34, %v1100_v56 }
 0xa91   :  { %1104 = vrot.lane.b32.xlu0 %v1102_v57, %s3234_s3 }
 0xa96   :  { %v1005_v58 = vpop.permute.xlu1 %1004 }
 0xa97   :  { %v1007_v59 = vmul.f32 %v3153_v37, %v1005_v58 }
 0xa99   :  { %1179 = vrot.lane.b32.xlu1 %v1007_v59, %s3234_s3 }
 0xb03   :  { %v1105_v61 = vpop.permute.xlu0 %1104 }
 0xb04   :  { %2767 = vmatmul.mubr.msk.f32.vlgmr.msra.gmra.mrb[14].mxu0 %vm193_vm2, %v1105_v61  ;;  %2789 = vmatmul.mubr.msk.f32.vlgmr.msra.gmra.mrb[8].mxu1 %vm193_vm2, %v1105_v61 }
 0xb05   :  { %2991 = vmatpush3.bf16.msra.mxu0 %v3406_v51  ;;  %2777 = vmatprep.mubr.msk.f32.mxu0 %vm3231_vm1, %v3232_v4 }
 0xb06   :  { %2992 = vmatprep.subr.bf16.mxu0 %v3230_v0  ;;  %3003 = vmatpush3.bf16.msra.mxu1 %v3357_v33 }
 0xb07   :  { %3004 = vmatprep.subr.bf16.mxu1 %v3230_v0  ;;  %2799 = vmatprep.mubr.msk.f32.mxu1 %vm3231_vm1, %v3232_v4 }
 0xb09   :  { %2994 = vmatpush3.bf16.msra.mxu0 %v3417_v55 }
 0xb0a   :  { %3013 = vmatprep.subr.bf16.mxu0 %v3230_v0  ;;  %3006 = vmatpush3.bf16.msra.mxu1 %v3373_v38 }
 0xb0b   :  { %v1180_v62 = vpop.permute.xlu1 %1179  ;;  %3007 = vmatprep.subr.bf16.mxu1 %v3230_v0 }
 0xb0c   :  { %2778 = vmatmul.mubr.msk.f32.vlgmr.msra.gmra.mrb[14].mxu0 %vm193_vm2, %v1180_v62 }
 0xb0d   :  { %3015 = vmatpush3.bf16.msra.mxu0 %v3297_v5  ;;  %2821 = vmatprep.mubr.msk.f32.mxu0 %vm3231_vm1, %v3232_v4 }
 0xb0e   :  { %3016 = vmatprep.subr.bf16.mxu0 %v3230_v0 }
 0xb11   :  { %3018 = vmatpush3.bf16.msra.mxu0 %v3314_v10 }
 0xb12   :  { %3019 = vmatprep.subr.bf16.mxu0 %v3230_v0 }
 0xbd7   :  { %v1344_v1 = vpop.f32.mrb[8].mxu1 }
 0xbd8   :  { %v1348_v2 = vadd.f32 %v1344_v1, %v175_v63  ;;  %v2790_v3 = vpop.f32.mrb[9].mxu1 }
 0xbda   :  { %3158 = vtanh.f32 %v1348_v2  ;;  %v2479_v13 = vmul.f32 -1.442695, %v1348_v2 }
 0xbdf   :  { %v1249_v6 = vpop.f32.mrb[14].mxu0 }
 0xbe0   :  { %v3076_v7 = vadd.f32 %v3442_v60, %v1249_v6  ;;  %v2779_v8 = vpop.f32.mrb[15].mxu0 }
 0xbe2   :  { %3160 = vtanh.f32 %v3076_v7  ;;  %v2477_v14 = vmul.f32 -1.442695, %v3076_v7 }
 0xbe3   :  { %3162 = vpow2.f32 %v2479_v13 }
 0xbe4   :  { %v3159_v9 = vpop.eup %3158  ;;  %3164 = vpow2.f32 %v2477_v14 }
 0xbe5   :  { %1358 = vrot.lane.b32.xlu0 %v3159_v9, %s3233_s23 }
 0xbec   :  { %v3161_v11 = vpop.eup %3160 }
 0xbed   :  { %1263 = vrot.lane.b32.xlu1 %v3161_v11, %s3233_s23  ;;  %v3163_v46 = vpop.eup %3162 }
 0xbee   :  { %v1352_v15 = vadd.f32 1.0, %v3163_v46  ;;  %v3165_v16 = vpop.eup %3164 }
 0xbef   :  { %v1257_v17 = vadd.f32 1.0, %v3165_v16 }
 0xbf0   :  { %3166 = vrcp.f32 %v1352_v15 }
 0xbf1   :  { %3168 = vrcp.f32 %v1257_v17 }
 0xbfa   :  { %v3167_v18 = vpop.eup %3166 }
 0xbfb   :  { %v3169_v21 = vpop.eup %3168  ;;  %v1356_v24 = vmul.f32 %v3167_v18, %v3529_v49 }
 0xbfc   :  { %v1261_v28 = vmul.f32 %v3169_v21, %v3533_v44 }
 0xc57   :  { %v1359_v19 = vpop.permute.xlu0 %1358 }
 0xc58   :  { %v1361_v20 = vmul.f32 %v3167_v18, %v1359_v19 }
 0xc5a   :  { %1363 = vrot.lane.b32.xlu0 %v1361_v20, %s3234_s3 }
 0xc5f   :  { %v1264_v22 = vpop.permute.xlu1 %1263 }
 0xc60   :  { %v1266_v23 = vmul.f32 %v3169_v21, %v1264_v22 }
 0xc62   :  { %1268 = vrot.lane.b32.xlu1 %v1266_v23, %s3234_s3 }
 0xccc   :  { %v1364_v25 = vpop.permute.xlu0 %1363 }
 0xccd   :  { %v3569_v26 = vadd.f32 %v1364_v25, %v1356_v24 }
 0xccf   :  { %3170 = vtanh.f32 %v3569_v26 }
 0xcd4   :  { %v1269_v29 = vpop.permute.xlu1 %1268 }
 0xcd5   :  { %v3573_v27 = vadd.f32 %v1269_v29, %v1261_v28 }
 0xcd7   :  { %3172 = vtanh.f32 %v3573_v27 }
 0xcd9   :  { %v3171_v43 = vpop.eup %3170 }
 0xcda   :  { %1369 = vrot.lane.b32.xlu0 %v3171_v43, %s3233_s23 }
 0xce1   :  { %v3173_v30 = vpop.eup %3172 }
 0xce2   :  { %1274 = vrot.lane.b32.xlu1 %v3173_v30, %s3233_s23 }
 0xd4c   :  { %v1370_v31 = vpop.permute.xlu0 %1369 }
 0xd4d   :  { %v1372_v32 = vmul.f32 %v3167_v18, %v1370_v31 }
 0xd4f   :  { %1374 = vrot.lane.b32.xlu0 %v1372_v32, %s3234_s3 }
 0xd54   :  { %v1275_v34 = vpop.permute.xlu1 %1274 }
 0xd55   :  { %v1277_v35 = vmul.f32 %v3169_v21, %v1275_v34  ;;  %v185_v21 = vadd.f32 %v3332_v12, %v3398_v48 }
 0xd57   :  { %1449 = vrot.lane.b32.xlu1 %v1277_v35, %s3234_s3 }
 0xdc1   :  { %v1375_v36 = vpop.permute.xlu0 %1374 }
 0xdc2   :  { %2800 = vmatmul.mubr.msk.f32.vlgmr.msra.gmra.mrb[10].mxu1 %vm193_vm2, %v1375_v36  ;;  %2822 = vmatmul.mubr.msk.f32.vlgmr.msra.gmra.mrb[16].mxu0 %vm193_vm2, %v1375_v36 }
 0xdc3   :  { %3009 = vmatpush3.bf16.msra.mxu1 %v3406_v51  ;;  %2810 = vmatprep.mubr.msk.f32.mxu1 %vm3231_vm1, %v3232_v4 }
 0xdc4   :  { %3010 = vmatprep.subr.bf16.mxu1 %v3230_v0  ;;  %3021 = vmatpush3.bf16.msra.mxu0 %v3357_v33 }
 0xdc5   :  { %3022 = vmatprep.subr.bf16.mxu0 %v3230_v0  ;;  %2832 = vmatprep.mubr.msk.f32.mxu0 %vm3231_vm1, %v3232_v4 }
 0xdc7   :  { %3012 = vmatpush3.bf16.msra.mxu1 %v3417_v55 }
 0xdc8   :  { %3031 = vmatprep.subr.bf16.mxu1 %v3230_v0  ;;  %3024 = vmatpush3.bf16.msra.mxu0 %v3373_v38 }
 0xdc9   :  { %v1450_v37 = vpop.permute.xlu1 %1449  ;;  %3025 = vmatprep.subr.bf16.mxu0 %v3230_v0 }
 0xdca   :  { %2811 = vmatmul.mubr.msk.f32.vlgmr.msra.gmra.mrb[10].mxu1 %vm193_vm2, %v1450_v37 }
 0xdcb   :  { %3033 = vmatpush3.bf16.msra.mxu1 %v3297_v5  ;;  %2854 = vmatprep.mubr.msk.f32.mxu1 %vm3231_vm1, %v3232_v4 }
 0xdcc   :  { %3034 = vmatprep.subr.bf16.mxu1 %v3230_v0 }
 0xdcf   :  { %3036 = vmatpush3.bf16.msra.mxu1 %v3314_v10 }
 0xdd0   :  { %3037 = vmatprep.subr.bf16.mxu1 %v3230_v0 }
 0xe95   :  { %v1614_v40 = vpop.f32.mrb[16].mxu0 }
 0xe96   :  { %v1618_v41 = vadd.f32 %v1614_v40, %v180_v39  ;;  %v2823_v42 = vpop.f32.mrb[17].mxu0 }
 0xe98   :  { %3174 = vtanh.f32 %v1618_v41  ;;  %v2484_v54 = vmul.f32 -1.442695, %v1618_v41 }
 0xe9d   :  { %v1519_v49 = vpop.f32.mrb[10].mxu1 }
 0xe9e   :  { %v3077_v50 = vadd.f32 %v3442_v60, %v1519_v49  ;;  %v2812_v52 = vpop.f32.mrb[11].mxu1 }
 0xea0   :  { %3176 = vtanh.f32 %v3077_v50  ;;  %v2482_v56 = vmul.f32 -1.442695, %v3077_v50 }
 0xea1   :  { %3178 = vpow2.f32 %v2484_v54 }
 0xea2   :  { %v3175_v44 = vpop.eup %3174  ;;  %3180 = vpow2.f32 %v2482_v56 }
 0xea3   :  { %1628 = vrot.lane.b32.xlu0 %v3175_v44, %s3233_s23 }
 0xeaa   :  { %v3177_v53 = vpop.eup %3176 }
 0xeab   :  { %1533 = vrot.lane.b32.xlu1 %v3177_v53, %s3233_s23  ;;  %v3179_v45 = vpop.eup %3178 }
 0xeac   :  { %v1622_v57 = vadd.f32 1.0, %v3179_v45  ;;  %v3181_v58 = vpop.eup %3180 }
 0xead   :  { %v1527_v59 = vadd.f32 1.0, %v3181_v58 }
 0xeae   :  { %3182 = vrcp.f32 %v1622_v57 }
 0xeaf   :  { %3184 = vrcp.f32 %v1527_v59 }
 0xeb8   :  { %v3183_v61 = vpop.eup %3182 }
 0xeb9   :  { %v3185_v1 = vpop.eup %3184  ;;  %v1626_v6 = vmul.f32 %v3183_v61, %v3569_v26 }
 0xeba   :  { %v1531_v9 = vmul.f32 %v3185_v1, %v3573_v27 }
 0xf15   :  { %v1629_v62 = vpop.permute.xlu0 %1628 }
 0xf16   :  { %v1631_v63 = vmul.f32 %v3183_v61, %v1629_v62 }
 0xf18   :  { %1633 = vrot.lane.b32.xlu0 %v1631_v63, %s3234_s3 }
 0xf1d   :  { %v1534_v2 = vpop.permute.xlu1 %1533 }
 0xf1e   :  { %v1536_v3 = vmul.f32 %v3185_v1, %v1534_v2 }
 0xf20   :  { %1538 = vrot.lane.b32.xlu1 %v1536_v3, %s3234_s3 }
 0xf8a   :  { %v1634_v7 = vpop.permute.xlu0 %1633 }
 0xf8b   :  { %v3609_v8 = vadd.f32 %v1634_v7, %v1626_v6 }
 0xf8d   :  { %3186 = vtanh.f32 %v3609_v8 }
 0xf92   :  { %v1539_v11 = vpop.permute.xlu1 %1538 }
 0xf93   :  { %v3613_v13 = vadd.f32 %v1539_v11, %v1531_v9 }
 0xf95   :  { %3188 = vtanh.f32 %v3613_v13 }
 0xf97   :  { %v3187_v14 = vpop.eup %3186 }
 0xf98   :  { %1639 = vrot.lane.b32.xlu0 %v3187_v14, %s3233_s23 }
 0xf9f   :  { %v3189_v46 = vpop.eup %3188 }
 0xfa0   :  { %1544 = vrot.lane.b32.xlu1 %v3189_v46, %s3233_s23 }
0x100a   :  { %v1640_v15 = vpop.permute.xlu0 %1639 }
0x100b   :  { %v1642_v16 = vmul.f32 %v3183_v61, %v1640_v15 }
0x100d   :  { %1644 = vrot.lane.b32.xlu0 %v1642_v16, %s3234_s3 }
0x1012   :  { %v1545_v17 = vpop.permute.xlu1 %1544 }
0x1013   :  { %v1547_v18 = vmul.f32 %v3185_v1, %v1545_v17 }
0x1015   :  { %1719 = vrot.lane.b32.xlu1 %v1547_v18, %s3234_s3 }
0x107f   :  { %v1645_v19 = vpop.permute.xlu0 %1644 }
0x1080   :  { %2833 = vmatmul.mubr.msk.f32.vlgmr.msra.gmra.mrb[18].mxu0 %vm193_vm2, %v1645_v19  ;;  %2855 = vmatmul.mubr.msk.f32.vlgmr.msra.gmra.mrb[12].mxu1 %vm193_vm2, %v1645_v19 }
0x1081   :  { %3027 = vmatpush3.bf16.msra.mxu0 %v3406_v51  ;;  %2843 = vmatprep.mubr.msk.f32.mxu0 %vm3231_vm1, %v3232_v4 }
0x1082   :  { %3028 = vmatprep.subr.bf16.mxu0 %v3230_v0  ;;  %3039 = vmatpush3.bf16.msra.mxu1 %v3357_v33 }
0x1083   :  { %3040 = vmatprep.subr.bf16.mxu1 %v3230_v0  ;;  %2865 = vmatprep.mubr.msk.f32.mxu1 %vm3231_vm1, %v3232_v4 }
0x1085   :  { %3030 = vmatpush3.bf16.msra.mxu0 %v3417_v55 }
0x1086   :  { %3049 = vmatprep.subr.bf16.mxu0 %v3230_v0  ;;  %3042 = vmatpush3.bf16.msra.mxu1 %v3373_v38 }
0x1087   :  { %v1720_v20 = vpop.permute.xlu1 %1719  ;;  %3043 = vmatprep.subr.bf16.mxu1 %v3230_v0 }
0x1088   :  { %2844 = vmatmul.mubr.msk.f32.vlgmr.msra.gmra.mrb[18].mxu0 %vm193_vm2, %v1720_v20 }
0x1089   :  { %3051 = vmatpush3.bf16.msra.mxu0 %v3297_v5  ;;  %2887 = vmatprep.mubr.msk.f32.mxu0 %vm3231_vm1, %v3232_v4 }
0x108a   :  { %3052 = vmatprep.subr.bf16.mxu0 %v3230_v0 }
0x108d   :  { %3054 = vmatpush3.bf16.msra.mxu0 %v3314_v10 }
0x108e   :  { %3055 = vmatprep.subr.bf16.mxu0 %v3230_v0 }
0x1153   :  { %v1884_v22 = vpop.f32.mrb[12].mxu1 }
0x1154   :  { %v1888_v23 = vadd.f32 %v1884_v22, %v185_v21  ;;  %v2856_v24 = vpop.f32.mrb[13].mxu1 }
0x1156   :  { %3190 = vtanh.f32 %v1888_v23  ;;  %v2489_v10 = vmul.f32 -1.442695, %v1888_v23 }
0x115b   :  { %v1789_v25 = vpop.f32.mrb[18].mxu0 }
0x115c   :  { %v3078_v26 = vadd.f32 %v3442_v60, %v1789_v25  ;;  %v2845_v5 = vpop.f32.mrb[19].mxu0 }
0x115e   :  { %3192 = vtanh.f32 %v3078_v26  ;;  %v2487_v27 = vmul.f32 -1.442695, %v3078_v26 }
0x115f   :  { %3194 = vpow2.f32 %v2489_v10 }
0x1160   :  { %v3191_v28 = vpop.eup %3190  ;;  %3196 = vpow2.f32 %v2487_v27 }
0x1161   :  { %1898 = vrot.lane.b32.xlu0 %v3191_v28, %s3233_s23 }
0x1168   :  { %v3193_v29 = vpop.eup %3192 }
0x1169   :  { %1803 = vrot.lane.b32.xlu1 %v3193_v29, %s3233_s23  ;;  %v3195_v48 = vpop.eup %3194 }
0x116a   :  { %v1892_v43 = vadd.f32 1.0, %v3195_v48  ;;  %v3197_v30 = vpop.eup %3196 }
0x116b   :  { %v1797_v31 = vadd.f32 1.0, %v3197_v30 }
0x116c   :  { %3198 = vrcp.f32 %v1892_v43 }
0x116d   :  { %3200 = vrcp.f32 %v1797_v31 }
0x1176   :  { %v3199_v32 = vpop.eup %3198 }
0x1177   :  { %v3201_v36 = vpop.eup %3200  ;;  %v1896_v40 = vmul.f32 %v3199_v32, %v3609_v8 }
0x1178   :  { %v1801_v49 = vmul.f32 %v3201_v36, %v3613_v13 }
0x11d3   :  { %v1899_v34 = vpop.permute.xlu0 %1898 }
0x11d4   :  { %v1901_v35 = vmul.f32 %v3199_v32, %v1899_v34 }
0x11d6   :  { %1903 = vrot.lane.b32.xlu0 %v1901_v35, %s3234_s3 }
0x11db   :  { %v1804_v37 = vpop.permute.xlu1 %1803 }
0x11dc   :  { %v1806_v39 = vmul.f32 %v3201_v36, %v1804_v37 }
0x11de   :  { %1808 = vrot.lane.b32.xlu1 %v1806_v39, %s3234_s3 }
0x1248   :  { %v1904_v41 = vpop.permute.xlu0 %1903 }
0x1249   :  { %v3649_v42 = vadd.f32 %v1904_v41, %v1896_v40  ;;  %v2359_v40 = vld [vmem:[%s3729_s7 + $0x8] sm:$0xff]  ;;  %v2360_v41 = vld [vmem:[%s3729_s7 + $0x10] sm:$0xff] }
0x124b   :  { %3202 = vtanh.f32 %v3649_v42 }
0x1250   :  { %v1809_v50 = vpop.permute.xlu1 %1808 }
0x1251   :  { %v3653_v52 = vadd.f32 %v1809_v50, %v1801_v49  ;;  %v2361_v49 = vld [vmem:[%s3729_s7 + $0x18] sm:$0xff] }
0x1252   :  { %v3071_v50 = vpack.c.bf16 %v2361_v49, %v2360_v41 }
0x1253   :  { %3204 = vtanh.f32 %v3653_v52 }
0x1255   :  { %v3203_v44 = vpop.eup %3202 }
0x1256   :  { %1909 = vrot.lane.b32.xlu0 %v3203_v44, %s3233_s23  ;;  %v14_v44 = vstv %s3730_s8 }
0x1257   :  { %15 = vst [vmem:[#allocation2] sm:$0x1] %v14_v44 }
0x125d   :  { %v3205_v53 = vpop.eup %3204 }
0x125e   :  { %1814 = vrot.lane.b32.xlu1 %v3205_v53, %s3233_s23 }
0x12c8   :  { %v1910_v54 = vpop.permute.xlu0 %1909 }
0x12c9   :  { %v1912_v56 = vmul.f32 %v3199_v32, %v1910_v54 }
0x12cb   :  { %1914 = vrot.lane.b32.xlu0 %v1912_v56, %s3234_s3 }
0x12d0   :  { %v1815_v45 = vpop.permute.xlu1 %1814 }
0x12d1   :  { %v1817_v57 = vmul.f32 %v3201_v36, %v1815_v45  ;;  %v2498_v45 = vld [vmem:[#allocation2] ss:$0 sm:$0xff] }
0x12d3   :  { %1989 = vrot.lane.b32.xlu1 %v1817_v57, %s3234_s3 }
0x133d   :  { %v1915_v58 = vpop.permute.xlu0 %1914 }
0x133e   :  { %2866 = vmatmul.mubr.msk.f32.vlgmr.msra.gmra.mrb[14].mxu1 %vm193_vm2, %v1915_v58  ;;  %2888 = vmatmul.mubr.msk.f32.vlgmr.msra.gmra.mrb[20].mxu0 %vm193_vm2, %v1915_v58 }
0x133f   :  { %3045 = vmatpush3.bf16.msra.mxu1 %v3406_v51  ;;  %2876 = vmatprep.mubr.msk.f32.mxu1 %vm3231_vm1, %v3232_v4 }
0x1340   :  { %3046 = vmatprep.subr.bf16.mxu1 %v3230_v0  ;;  %3057 = vmatpush3.bf16.msra.mxu0 %v3357_v33  ;;  %v190_v33 = vadd.f32 %v3396_v47, %v3332_v12 }
0x1341   :  { %3058 = vmatprep.subr.bf16.mxu0 %v3230_v0  ;;  %2898 = vmatprep.mubr.msk.f32.mxu0 %vm3231_vm1, %v3232_v4 }
0x1343   :  { %3048 = vmatpush3.bf16.msra.mxu1 %v3417_v55 }
0x1344   :  { %3060 = vmatpush3.bf16.msra.mxu0 %v3373_v38  ;;  %3067 = vmatprep.subr.bf16.mxu1 %v3230_v0 }
0x1345   :  { %v1990_v59 = vpop.permute.xlu1 %1989  ;;  %3061 = vmatprep.subr.bf16.mxu0 %v3230_v0 }
0x1346   :  { %2877 = vmatmul.mubr.msk.f32.vlgmr.msra.gmra.mrb[14].mxu1 %vm193_vm2, %v1990_v59 }
0x1347   :  { %2920 = vmatprep.mubr.msk.f32.mxu1 %vm3231_vm1, %v3232_v4 }
0x1411   :  { %v2154_v61 = vpop.f32.mrb[20].mxu0 }
0x1412   :  { %v2158_v62 = vadd.f32 %v2154_v61, %v190_v33  ;;  %v2889_v63 = vpop.f32.mrb[21].mxu0 }
0x1414   :  { %3206 = vtanh.f32 %v2158_v62  ;;  %v2494_v7 = vmul.f32 -1.442695, %v2158_v62 }
0x1419   :  { %v2059_v1 = vpop.f32.mrb[14].mxu1 }
0x141a   :  { %v3079_v38 = vadd.f32 %v3442_v60, %v2059_v1  ;;  %v2878_v2 = vpop.f32.mrb[15].mxu1 }
0x141c   :  { %3208 = vtanh.f32 %v3079_v38  ;;  %v2492_v8 = vmul.f32 -1.442695, %v3079_v38 }
0x141d   :  { %3210 = vpow2.f32 %v2494_v7 }
0x141e   :  { %v3207_v3 = vpop.eup %3206  ;;  %3212 = vpow2.f32 %v2492_v8 }
0x141f   :  { %2168 = vrot.lane.b32.xlu0 %v3207_v3, %s3233_s23 }
0x1426   :  { %v3209_v6 = vpop.eup %3208 }
0x1427   :  { %2073 = vrot.lane.b32.xlu1 %v3209_v6, %s3233_s23  ;;  %v3211_v12 = vpop.eup %3210 }
0x1428   :  { %v2162_v47 = vadd.f32 1.0, %v3211_v12  ;;  %v3213_v9 = vpop.eup %3212 }
0x1429   :  { %v2067_v11 = vadd.f32 1.0, %v3213_v9 }
0x142a   :  { %3214 = vrcp.f32 %v2162_v47 }
0x142b   :  { %3216 = vrcp.f32 %v2067_v11 }
0x1434   :  { %v3215_v13 = vpop.eup %3214 }
0x1435   :  { %v3217_v15 = vpop.eup %3216  ;;  %v2166_v18 = vmul.f32 %v3215_v13, %v3649_v42 }
0x1436   :  { %v2071_v21 = vmul.f32 %v3217_v15, %v3653_v52 }
0x1491   :  { %v2169_v14 = vpop.permute.xlu0 %2168 }
0x1492   :  { %v2171_v46 = vmul.f32 %v3215_v13, %v2169_v14 }
0x1494   :  { %2173 = vrot.lane.b32.xlu0 %v2171_v46, %s3234_s3 }
0x1499   :  { %v2074_v16 = vpop.permute.xlu1 %2073 }
0x149a   :  { %v2076_v17 = vmul.f32 %v3217_v15, %v2074_v16 }
0x149c   :  { %2078 = vrot.lane.b32.xlu1 %v2076_v17, %s3234_s3 }
0x1506   :  { %v2174_v19 = vpop.permute.xlu0 %2173 }
0x1507   :  { %v2176_v20 = vadd.f32 %v2174_v19, %v2166_v18 }
0x1509   :  { %3218 = vtanh.f32 %v2176_v20 }
0x150e   :  { %v2079_v22 = vpop.permute.xlu1 %2078 }
0x150f   :  { %v2081_v23 = vadd.f32 %v2079_v22, %v2071_v21 }
0x1511   :  { %3220 = vtanh.f32 %v2081_v23 }
0x1513   :  { %v3219_v24 = vpop.eup %3218 }
0x1514   :  { %2179 = vrot.lane.b32.xlu0 %v3219_v24, %s3233_s23 }
0x151b   :  { %v3221_v25 = vpop.eup %3220 }
0x151c   :  { %2084 = vrot.lane.b32.xlu1 %v3221_v25, %s3233_s23 }
0x1586   :  { %v2180_v26 = vpop.permute.xlu0 %2179 }
0x1587   :  { %v2182_v5 = vmul.f32 %v3215_v13, %v2180_v26 }
0x1589   :  { %2184 = vrot.lane.b32.xlu0 %v2182_v5, %s3234_s3 }
0x158e   :  { %v2085_v28 = vpop.permute.xlu1 %2084 }
0x158f   :  { %v2087_v29 = vmul.f32 %v3217_v15, %v2085_v28 }
0x1591   :  { %2259 = vrot.lane.b32.xlu1 %v2087_v29, %s3234_s3 }
0x15fb   :  { %v2185_v10 = vpop.permute.xlu0 %2184 }
0x15fc   :  { %2899 = vmatmul.mubr.msk.f32.vlgmr.msra.gmra.mrb[22].mxu0 %vm193_vm2, %v2185_v10 }
0x15fd   :  { %3063 = vmatpush3.bf16.msra.mxu0 %v3406_v51  ;;  %2909 = vmatprep.mubr.msk.f32.mxu0 %vm3231_vm1, %v3232_v4 }
0x15fe   :  { %3064 = vmatprep.subr.bf16.mxu0 %v3230_v0 }
0x1601   :  { %3066 = vmatpush3.bf16.msra.mxu0 %v3417_v55 }
0x1603   :  { %v2260_v27 = vpop.permute.xlu1 %2259 }
0x1604   :  { %2910 = vmatmul.mubr.msk.f32.vlgmr.msra.gmra.mrb[22].mxu0 %vm193_vm2, %v2260_v27 }
0x16d7   :  { %v2329_v48 = vpop.f32.mrb[22].mxu0 }
0x16d8   :  { %v3080_v43 = vadd.f32 %v3442_v60, %v2329_v48  ;;  %v2911_v30 = vpop.f32.mrb[23].mxu0  ;;  %v2358_v60 = vld [vmem:[%s3729_s7] sm:$0xff] }
0x16d9   :  { %v3068_v42 = vpack.c.bf16 %v2359_v40, %v2358_v60 }
0x16da   :  { %3222 = vtanh.f32 %v3080_v43  ;;  %v2497_v32 = vmul.f32 -1.442695, %v3080_v43 }
0x16db   :  { %3069 = vmatpush3.bf16.msra.mxu1 %v3068_v42 }
0x16dc   :  { %3224 = vpow2.f32 %v2497_v32  ;;  %3070 = vmatprep.subr.bf16.mxu1 %v3230_v0 }
0x16df   :  { %3072 = vmatpush3.bf16.msra.mxu1 %v3071_v50 }
0x16e4   :  { %v3223_v31 = vpop.eup %3222 }
0x16e5   :  { %2343 = vrot.lane.b32.xlu0 %v3223_v31, %s3233_s23 }
0x16e6   :  { %v3225_v51 = vpop.eup %3224 }
0x16e7   :  { %v2337_v34 = vadd.f32 1.0, %v3225_v51 }
0x16e9   :  { %3226 = vrcp.f32 %v2337_v34 }
0x16f3   :  { %v3227_v4 = vpop.eup %3226 }
0x16f4   :  { %v2341_v55 = vmul.f32 %v3227_v4, %v2081_v23 }
0x1757   :  { %v2344_v35 = vpop.permute.xlu0 %2343 }
0x1758   :  { %v2346_v36 = vmul.f32 %v3227_v4, %v2344_v35 }
0x175a   :  { %2348 = vrot.lane.b32.xlu1 %v2346_v36, %s3234_s3 }
0x17cc   :  { %v2349_v37 = vpop.permute.xlu1 %2348 }
0x17cd   :  { %v2351_v39 = vadd.f32 %v2349_v37, %v2341_v55 }
0x17cf   :  { %3228 = vtanh.f32 %v2351_v39 }
0x17d9   :  { %v3229_v52 = vpop.eup %3228 }
0x17da   :  { %2354 = vrot.lane.b32.xlu0 %v3229_v52, %s3233_s23 }
0x184c   :  { %v2355_v53 = vpop.permute.xlu0 %2354 }
0x184d   :  { %v2357_v54 = vmul.f32 %v3227_v4, %v2355_v53 }
0x184f   :  { %2370 = vrot.lane.b32.xlu1 %v2357_v54, %s3234_s3 }
0x18c1   :  { %v2371_v56 = vpop.permute.xlu1 %2370 }
0x18c2   :  { %2921 = vmatmul.mubr.msk.f32.vlgmr.msra.gmra.mrb[16].mxu1 %vm193_vm2, %v2371_v56 }
0x1995   :  { %v2440_v57 = vpop.f32.mrb[16].mxu1 }
0x1996   :  { %v2441_v0 = vadd.f32 %v2498_v45, %v2440_v57  ;;  %v2922_v58 = vpop.f32.mrb[17].mxu1 }
0x1998   :  { %2445 = vst.msk [vmem:[%s3731_s9] sm:$0xff] %vm2444_vm3, %v2441_v0 }

</bundles_post_ra>
